<compile_context>
chip_gen: v5e
topology: v5e:2x2
jax: 0.10.0
libtpu: 0.0.40
codegen_flags: <defaults>
</compile_context>

<pallas_src>
import functools
import numpy as np

import jax
import jax.numpy as jnp
from jax.experimental import pallas as pl
from jax.experimental.pallas import tpu as pltpu


_SHIFT_STEP = 2  # CASSI dispersion step (pixels per spectral channel)


# ----------------------------------------------------------------------------
# Generation-aware sizing (v5e / v6e: 128 MiB VMEM, v7x: 64 MiB per TC)
# ----------------------------------------------------------------------------

def _detect_vmem_bytes():
    try:
        info = pltpu.get_tpu_info()
        for name in ("vmem_capacity_bytes", "vmem_bytes", "vmem_size_bytes"):
            v = getattr(info, name, None)
            if v:
                return int(v)
    except Exception:
        pass
    return 64 << 20  # conservative default (v7x per-TensorCore VMEM)


_VMEM_BYTES = _detect_vmem_bytes()

if _VMEM_BYTES >= (100 << 20):        # v5e / v6e
    _VMEM_LIMIT = 96 << 20
    _TILE_H_CAP, _TILE_H_BUDGET = 128, 20 << 20
    _GAP_TILE_CAP = 256
    _TILE_M_CAP, _TILE_M_BUDGET = 4096, 20 << 20
elif _VMEM_BYTES >= (48 << 20):       # v7x
    _VMEM_LIMIT = 40 << 20
    _TILE_H_CAP, _TILE_H_BUDGET = 64, 6 << 20
    _GAP_TILE_CAP = 128
    _TILE_M_CAP, _TILE_M_BUDGET = 2048, 8 << 20
else:                                 # unknown / small parts: stay conservative
    _VMEM_LIMIT = max(_VMEM_BYTES - (4 << 20), 8 << 20)
    _TILE_H_CAP, _TILE_H_BUDGET = 32, 2 << 20
    _GAP_TILE_CAP = 64
    _TILE_M_CAP, _TILE_M_BUDGET = 1024, 2 << 20


def _cparams(n_grid):
    return pltpu.CompilerParams(
        dimension_semantics=("parallel",) * n_grid,
        vmem_limit_bytes=_VMEM_LIMIT)


def _pick_tile_h(H, row_bytes, cap=None, budget=None):
    """Largest even divisor of H that is <= cap and keeps ~T*row_bytes <= budget."""
    cap = _TILE_H_CAP if cap is None else cap
    budget = _TILE_H_BUDGET if budget is None else budget
    limit = min(H, cap, max(2, budget // max(row_bytes, 1)))
    if H > 8:
        limit = min(limit, H // 2)     # >= 2 grid steps even at small test shapes
    for t in range(limit, 1, -1):
        if H % t == 0 and t % 2 == 0:
            return t
    return H


def _pick_tile_m(M, row_bytes, cap=None, budget=None):
    """Largest divisor of M that is a multiple of 8, <= cap, and fits the budget."""
    cap = _TILE_M_CAP if cap is None else cap
    budget = _TILE_M_BUDGET if budget is None else budget
    limit = min(M, cap, max(8, budget // max(row_bytes, 1)))
    for t in range(limit, 7, -1):
        if M % t == 0 and t % 8 == 0:
            return t
    return M


# ----------------------------------------------------------------------------
# pltpu.roll capability probing (run once, eagerly, before tracing kernels)
# ----------------------------------------------------------------------------
#  _ROLLCFG["basic"] : set of widths where a plain sublane roll (axis=1) works.
#  _ROLLCFG["fwd"][W]: stride value s such that pltpu.roll(v, 0, 1, stride=s,
#                      stride_axis=2) rolls channel c by +_SHIFT_STEP*c along W.
#  _ROLLCFG["bwd"][W]: stride value for a -_SHIFT_STEP*c per-channel roll.
# If a probe fails (lowering error / wrong semantics) we keep the lowering-safe
# fallback for that width, so correctness never depends on the probe passing.

_ROLLCFG = {"basic": set(), "fwd": {}, "bwd": {}}


def _roll_per_channel_ref(v, step):
    """Reference per-channel roll: out[..., w, c] = v[..., (w - step*c) % W, c]."""
    C = v.shape[-1]
    return jnp.stack([jnp.roll(v[..., c], step * c, axis=-1) for c in range(C)],
                     axis=-1)


def _probe_basic_roll(W, K, dtype=jnp.bfloat16):
    x = jax.random.normal(jax.random.PRNGKey(7), (8, W, K)).astype(dtype)

    def k(x_ref, o_ref):
        o_ref[...] = pltpu.roll(x_ref[...], 1, 1)

    try:
        out = pl.pallas_call(
            k, out_shape=jax.ShapeDtypeStruct(x.shape, dtype))(x)
        out = jax.block_until_ready(out)
        return bool(jnp.array_equal(out, jnp.roll(x, 1, axis=1)))
    except Exception:
        return False


def _mk_strided_kernel(stride):
    def k(x_ref, o_ref):
        o_ref[...] = pltpu.roll(x_ref[...], 0, 1, stride=stride, stride_axis=2)
    return k


def _probe_strided_roll(W, C, step):
    x = jax.random.normal(jax.random.PRNGKey(11), (8, W, C), jnp.float32)
    ref_fwd = _roll_per_channel_ref(x, step)
    ref_bwd = _roll_per_channel_ref(x, -step)
    for s in (step, -step, W - step):
        try:
            out = pl.pallas_call(
                _mk_strided_kernel(s),
                out_shape=jax.ShapeDtypeStruct(x.shape, jnp.float32))(x)
            out = jax.block_until_ready(out)
        except Exception:
            continue
        if bool(jnp.array_equal(out, ref_fwd)):
            _ROLLCFG["fwd"].setdefault(W, s)
        if bool(jnp.array_equal(out, ref_bwd)):
            _ROLLCFG["bwd"].setdefault(W, s)


def configure_for_tpu(full_width, channels=28, step=_SHIFT_STEP):
    """Probe pltpu.roll support at the widths this net uses.  Call OUTSIDE jit."""
    conv_ws = sorted({full_width, full_width // 2, full_width // 4})
    gap_ws = sorted({full_width, full_width // 2})
    for w in conv_ws:
        if w >= 2 and _probe_basic_roll(w, 3 * channels):
            _ROLLCFG["basic"].add(w)
    for w in gap_ws:
        if w >= 2:
            _probe_strided_roll(w, channels, step)


# ----------------------------------------------------------------------------
# Fused double_conv (3x3 + ReLU, 3x3 + ReLU [, 1x1 + tanh + residual]) kernel
# ----------------------------------------------------------------------------

def _shift_cols(v, delta):
    """Shift v (t, W, K) by `delta` (+1 or -1) along the W axis with zero fill."""
    t, W, K = v.shape
    if W in _ROLLCFG["basic"]:
        r = pltpu.roll(v, delta % W, 1)                       # XLU sublane rotate
        col = jax.lax.broadcasted_iota(jnp.int32, (1, W, 1), 1)
        edge = 0 if delta > 0 else W - 1
        return jnp.where(col == edge, jnp.zeros_like(r), r)
    # Lowering-safe fallback (zero-column concatenate).
    z = jnp.zeros((t, 1, K), v.dtype)
    if delta > 0:
        return jnp.concatenate([z, v[:, :W - 1, :]], axis=1)
    return jnp.concatenate([v[:, 1:, :], z], axis=1)


def _conv3x3_tile(xin, w, b, t_out, relu=True):
    """3x3 'same' conv on an H-extended tile.

    xin : (t_out + 2, W, Ci)  input rows [-1, t_out+1) relative to the output,
                              out-of-image rows already zeroed by the caller.
    w   : (3, 3*Ci, Co)       packed as w[kx, ky*Ci + ci, co]  (bf16).
    b   : (1, Co)             f32 bias.
    Returns f32 (t_out, W, Co).
    """
    _, W, Ci = xin.shape
    Co = w.shape[-1]
    K = 3 * Ci
    # Fold the 3 kernel rows into K (im2col along ky): deep-K MXU operands.
    s = jnp.concatenate(
        [xin[0:t_out], xin[1:t_out + 1], xin[2:t_out + 2]], axis=-1)  # (t_out,W,K)
    s_l = _shift_cols(s, +1)   # reads col w-1 (kx=0)
    s_r = _shift_cols(s, -1)   # reads col w+1 (kx=2)
    m = t_out * W
    acc = jnp.dot(s_l.reshape(m, K), w[0], preferred_element_type=jnp.float32)
    acc = acc + jnp.dot(s.reshape(m, K), w[1], preferred_element_type=jnp.float32)
    acc = acc + jnp.dot(s_r.reshape(m, K), w[2], preferred_element_type=jnp.float32)
    acc = acc + b
    if relu:
        acc = jnp.maximum(acc, 0.0)
    return acc.reshape(t_out, W, Co)


def _double_conv_kernel(*refs, fuse_last):
    """Fused (conv3x3+ReLU, conv3x3+ReLU [, conv1x1+tanh+residual]) on one tile."""
    if fuse_last:
        (x_ref, top_ref, bot_ref, w1_ref, b1_ref, w2_ref, b2_ref,
         wl_ref, bl_ref, res_ref, o_ref, mid_ref) = refs
    else:
        (x_ref, top_ref, bot_ref, w1_ref, b1_ref, w2_ref, b2_ref,
         o_ref, mid_ref) = refs

    i = pl.program_id(0)
    nh = pl.num_programs(0)
    T = x_ref.shape[0]

    top = top_ref[...]
    top = jnp.where(i == 0, jnp.zeros_like(top), top)           # H zero padding
    bot = bot_ref[...]
    bot = jnp.where(i == nh - 1, jnp.zeros_like(bot), bot)
    xin = jnp.concatenate([top, x_ref[...], bot], axis=0)        # (T + 4, W, Ci)

    mid = _conv3x3_tile(xin, w1_ref[...], b1_ref[...], T + 2, relu=True)
    # Rows of `mid` that fall outside the image are conv2's zero padding,
    # not conv1 outputs -> force them to zero.
    row = jax.lax.broadcasted_iota(jnp.int32, (T + 2, 1, 1), 0)
    g_row = i * T - 1 + row
    mid = jnp.where((g_row >= 0) & (g_row < nh * T), mid, 0.0)
    mid_ref[...] = mid.astype(mid_ref.dtype)

    out = _conv3x3_tile(mid_ref[...], w2_ref[...], b2_ref[...], T, relu=True)

    if fuse_last:
        # Epilogue: 1x1 conv -> tanh -> + residual, fused on the conv2 tile.
        Tt, W, Cm2 = out.shape
        co = wl_ref.shape[1]
        z = jnp.dot(out.astype(jnp.bfloat16).reshape(Tt * W, Cm2), wl_ref[...],
                    preferred_element_type=jnp.float32)
        z = jnp.tanh(z + bl_ref[...])
        z = z.reshape(Tt, W, co) + res_ref[...].astype(jnp.float32)
        o_ref[...] = z.astype(o_ref.dtype)
    else:
        o_ref[...] = out.astype(o_ref.dtype)


def fused_double_conv(x, w1, b1, w2, b2, last=None, residual=None):
    """double_conv(x) [= relu(conv3x3(relu(conv3x3(x))))], optionally followed by
    a fused tanh(conv1x1(.)) + residual epilogue.  x: (B, H, W, Ci) bf16."""
    B, H, W, Ci = x.shape
    Cm = w1.shape[-1]
    C2 = w2.shape[-1]
    Co = C2 if last is None else last[0].shape[-1]
    T = _pick_tile_h(H, W * (18 * Ci + 8 * max(Cm, C2, Co)))
    nh = H // T
    half = T // 2
    nhalo = H // 2

    x_spec = pl.BlockSpec((None, T, W, Ci), lambda i, b: (b, i, 0, 0))
    top_spec = pl.BlockSpec(
        (None, 2, W, Ci), lambda i, b: (b, jnp.maximum(i * half - 1, 0), 0, 0))
    bot_spec = pl.BlockSpec(
        (None, 2, W, Ci),
        lambda i, b: (b, jnp.minimum((i + 1) * half, nhalo - 1), 0, 0))

    in_specs = [x_spec, top_spec, bot_spec,
                pl.BlockSpec((3, 3 * Ci, Cm), lambda i, b: (0, 0, 0)),
                pl.BlockSpec((1, Cm), lambda i, b: (0, 0)),
                pl.BlockSpec((3, 3 * Cm, C2), lambda i, b: (0, 0, 0)),
                pl.BlockSpec((1, C2), lambda i, b: (0, 0))]
    args = [x, x, x, w1, b1.reshape(1, Cm), w2, b2.reshape(1, C2)]
    if last is not None:
        wl, bl = last
        in_specs += [pl.BlockSpec((C2, Co), lambda i, b: (0, 0)),
                     pl.BlockSpec((1, Co), lambda i, b: (0, 0)),
                     pl.BlockSpec((None, T, W, Co), lambda i, b: (b, i, 0, 0))]
        args += [wl, bl.reshape(1, Co), residual]

    return pl.pallas_call(
        functools.partial(_double_conv_kernel, fuse_last=last is not None),
        out_shape=jax.ShapeDtypeStruct((B, H, W, Co), jnp.bfloat16),
        grid=(nh, B),                      # H-tiles first: even 2-TC sharding
        in_specs=in_specs,
        out_specs=pl.BlockSpec((None, T, W, Co), lambda i, b: (b, i, 0, 0)),
        scratch_shapes=[pltpu.VMEM((T + 2, W, Cm), jnp.bfloat16)],
        compiler_params=_cparams(2),
    )(*args)


# ----------------------------------------------------------------------------
# M-tiled matmul kernel (ConvTranspose2d matmul with fused bias / ReLU)
# ----------------------------------------------------------------------------

def _matmul_kernel(x_ref, w_ref, b_ref, o_ref, *, act):
    acc = jnp.dot(x_ref[...], w_ref[...], preferred_element_type=jnp.float32)
    acc = acc + b_ref[...]
    if act == "relu":
        acc = jnp.maximum(acc, 0.0)
    o_ref[...] = acc.astype(o_ref.dtype)


def _tiled_matmul(x2, w, b, act="none"):
    """(B, M, K) @ (K, N) + b with fused activation, M-tiled grid."""
    B, M, K = x2.shape
    N = w.shape[1]
    TM = _pick_tile_m(M, 2 * K + 8 * N)
    nm = M // TM
    return pl.pallas_call(
        functools.partial(_matmul_kernel, act=act),
        out_shape=jax.ShapeDtypeStruct((B, M, N), jnp.bfloat16),
        grid=(nm, B),
        in_specs=[pl.BlockSpec((None, TM, K), lambda i, bb: (bb, i, 0)),
                  pl.BlockSpec((K, N), lambda i, bb: (0, 0)),
                  pl.BlockSpec((1, N), lambda i, bb: (0, 0))],
        out_specs=pl.BlockSpec((None, TM, N), lambda i, bb: (bb, i, 0)),
        compiler_params=_cparams(2),
    )(x2, w, b.reshape(1, N))


def conv_transpose_2x2(x, w, b, relu=False):
    """ConvTranspose2d(k=2, s=2).  w: (Ci, 4*Co) packed [co*4 + ky*2 + kx]."""
    B, h, wd, Ci = x.shape
    Co = w.shape[1] // 4
    out = _tiled_matmul(x.reshape(B, h * wd, Ci), w, b,
                        act="relu" if relu else "none")
    # TODO(synk): fold this pixel-shuffle into the kernel's store (lane-dense
    # interleaved writes) to drop one XLA transpose pass per up-sample.
    out = out.reshape(B, h, wd, Co, 2, 2)
    out = jnp.transpose(out, (0, 1, 4, 2, 5, 3))
    return out.reshape(B, 2 * h, 2 * wd, Co)


# ----------------------------------------------------------------------------
# Fused  shift -> GAP projection -> shift_back  kernel
# ----------------------------------------------------------------------------

def _spectral_roll(v, step):
    """Per-channel roll along W:  out[..., w, c] = v[..., (w - step*c) % W, c]."""
    _, W, C = v.shape
    table = _ROLLCFG["fwd"] if step > 0 else _ROLLCFG["bwd"]
    stride = table.get(W) if abs(step) == _SHIFT_STEP else None
    if stride is not None:
        # Single strided XLU rotate (validated by configure_for_tpu's probe).
        return pltpu.roll(v, 0, 1, stride=stride, stride_axis=2)
    # Lowering-safe fallback: slice+concat+select chain, entirely in VMEM.
    lane = jax.lax.broadcasted_iota(jnp.int32, (1, 1, C), 2)
    shift_of_lane = jnp.mod(step * lane, W)
    shifts = sorted({(step * c) % W for c in range(C)} - {0})
    out = v
    for sh in shifts:
        rolled = jnp.concatenate([v[:, W - sh:, :], v[:, :W - sh, :]], axis=1)
        out = jnp.where(shift_of_lane == sh, rolled, out)
    return out


def _gap_kernel(*refs, pre_shift, init_from_y, step):
    """Fused  [shift] -> x + At((y - A(x, Phi)) / Phi_s, Phi) -> shift_back."""
    if init_from_y:
        phi_ref, y_ref, ps_ref, o_ref = refs
    else:
        x_ref, phi_ref, y_ref, ps_ref, o_ref = refs
    phi = phi_ref[...].astype(jnp.float32)
    y = y_ref[...]                                       # (T, W, 1) f32
    ps = ps_ref[...]                                     # (T, W, 1) f32
    if init_from_y:
        x = y * phi                                      # At(y, Phi)
    else:
        x = x_ref[...].astype(jnp.float32)
    xs = _spectral_roll(x, step) if pre_shift else x
    yb = jnp.sum(xs * phi, axis=-1, keepdims=True)       # A(shift(x), Phi)
    upd = (y - yb) / ps * phi                            # exact division (f32)
    if pre_shift:
        # shift_back(shift(x) + upd) == x + shift_back(upd)
        out = x + _spectral_roll(upd, -step)
    else:
        out = _spectral_roll(x + upd, -step)
    o_ref[...] = out.astype(o_ref.dtype)


def gap_project(x, phi, y, phi_s, *, pre_shift, step=_SHIFT_STEP):
    """x (None -> x := At(y, Phi)), phi: (B,H,W,C);  y, phi_s: (B,H,W)."""
    B, H, W, C = phi.shape
    T = _pick_tile_h(H, 32 * W * C, cap=_GAP_TILE_CAP)
    nh = H // T
    y4 = y[..., None].astype(jnp.float32)
    ps4 = phi_s[..., None].astype(jnp.float32)
    full = pl.BlockSpec((None, T, W, C), lambda i, b: (b, i, 0, 0))
    one = pl.BlockSpec((None, T, W, 1), lambda i, b: (b, i, 0, 0))
    specs, args = [], []
    if x is not None:
        specs.append(full)
        args.append(x)
    specs += [full, one, one]
    args += [phi, y4, ps4]
    return pl.pallas_call(
        functools.partial(_gap_kernel, pre_shift=pre_shift,
                          init_from_y=x is None, step=step),
        out_shape=jax.ShapeDtypeStruct((B, H, W, C), jnp.bfloat16),
        grid=(nh, B),
        in_specs=specs,
        out_specs=full,
        compiler_params=_cparams(2),
    )(*args)


# ----------------------------------------------------------------------------
# JAX glue (cheap data movement only)
# ----------------------------------------------------------------------------

def maxpool2x2(x):
    B, H, W, C = x.shape
    return jnp.max(x.reshape(B, H // 2, 2, W // 2, 2, C), axis=(2, 4))


def maxpool2x2_2d(y):
    B, H, W = y.shape
    return jnp.max(y.reshape(B, H // 2, 2, W // 2, 2), axis=(2, 4))


def phi_sum_guard(phi):
    # TODO(synk): fuse this reduction + guard into the preceding kernel epilogue.
    s = jnp.sum(phi.astype(jnp.float32), axis=-1)
    return jnp.where(s == 0.0, 1.0, s)


# ----------------------------------------------------------------------------
# U-Net blocks (final double_conv has the 1x1 + tanh + residual fused in)
# ----------------------------------------------------------------------------

def double_conv_apply(p, x):
    return fused_double_conv(x, p["w1"], p["b1"], p["w2"], p["b2"])


def unet_apply(p, x):
    inp = x
    c1 = double_conv_apply(p["down1"], x)
    d1 = maxpool2x2(c1)
    c2 = double_conv_apply(p["down2"], d1)
    d2 = maxpool2x2(c2)
    c3 = double_conv_apply(p["down3"], d2)
    u2 = conv_transpose_2x2(c3, *p["up2"], relu=True)
    u2 = double_conv_apply(p["upc2"], jnp.concatenate([u2, c2], axis=-1))
    u1 = conv_transpose_2x2(u2, *p["up1"], relu=True)
    q = p["upc1"]
    return fused_double_conv(jnp.concatenate([u1, c1], axis=-1),
                             q["w1"], q["b1"], q["w2"], q["b2"],
                             last=p["last"], residual=inp)


def unet2_apply(p, x):
    inp = x
    c1 = double_conv_apply(p["down1"], x)
    d1 = maxpool2x2(c1)
    c2 = double_conv_apply(p["down2"], d1)
    u1 = conv_transpose_2x2(c2, *p["up1"], relu=True)
    q = p["upc1"]
    return fused_double_conv(jnp.concatenate([u1, c1], axis=-1),
                             q["w1"], q["b1"], q["w2"], q["b2"],
                             last=p["last"], residual=inp)


# ----------------------------------------------------------------------------
# Deterministic parameter init (bf16 packed weights, f32 biases)
# ----------------------------------------------------------------------------

def _pack_conv3x3(w4):
    """(ky, kx, ci, co) f32  ->  (kx, ky*Ci + ci, co) bf16 (deep-K MXU operand)."""
    ky, kx, ci, co = w4.shape
    return jnp.transpose(w4, (1, 0, 2, 3)).reshape(kx, ky * ci, co).astype(jnp.bfloat16)


def _conv3x3_params(key, cin, cout):
    kw, kb = jax.random.split(key)
    w = jax.random.normal(kw, (3, 3, cin, cout), jnp.float32) / np.sqrt(9 * cin)
    b = 0.01 * jax.random.normal(kb, (cout,), jnp.float32)
    return _pack_conv3x3(w), b


def _dense_params(key, cin, cout):
    kw, kb = jax.random.split(key)
    w = (jax.random.normal(kw, (cin, cout), jnp.float32) / np.sqrt(cin)).astype(jnp.bfloat16)
    b = 0.01 * jax.random.normal(kb, (cout,), jnp.float32)
    return w, b


def _tconv_params(key, cin, cout):
    kw, kb = jax.random.split(key)
    w = jax.random.normal(kw, (cin, cout, 2, 2), jnp.float32) / np.sqrt(4 * cin)
    b = 0.01 * jax.random.normal(kb, (cout,), jnp.float32)
    wp = w.reshape(cin, cout * 4).astype(jnp.bfloat16)   # columns co*4 + ky*2 + kx
    bp = jnp.repeat(b, 4)                                # matches column packing
    return wp, bp


def _init_double_conv(key, cin, cout):
    k1, k2 = jax.random.split(key)
    w1, b1 = _conv3x3_params(k1, cin, cout)
    w2, b2 = _conv3x3_params(k2, cout, cout)
    return {"w1": w1, "b1": b1, "w2": w2, "b2": b2}


def init_unet(key, in_ch=28, out_ch=28):
    k = list(jax.random.split(key, 8))
    return {
        "down1": _init_double_conv(k[0], in_ch, 32),
        "down2": _init_double_conv(k[1], 32, 64),
        "down3": _init_double_conv(k[2], 64, 128),
        "up2": _tconv_params(k[3], 128, 64),
        "upc2": _init_double_conv(k[4], 128, 64),
        "up1": _tconv_params(k[5], 64, 32),
        "upc1": _init_double_conv(k[6], 64, 32),
        "last": _dense_params(k[7], 32, out_ch),
    }


def init_unet2(key, in_ch=28, out_ch=28):
    k = list(jax.random.split(key, 5))
    return {
        "down1": _init_double_conv(k[0], in_ch, 32),
        "down2": _init_double_conv(k[1], 32, 64),
        "up1": _tconv_params(k[2], 64, 32),
        "upc1": _init_double_conv(k[3], 64, 32),
        "last": _dense_params(k[4], 32, out_ch),
    }


def init_gap_net(key):
    keys = list(jax.random.split(key, 11))
    p = {"unet1": init_unet(keys[0]), "unet9": init_unet(keys[8])}
    for i in range(2, 9):
        p[f"unet{i}"] = init_unet2(keys[i - 1])
    p["up1x"] = _tconv_params(keys[9], 28, 28)     # upsample1_x (no ReLU)
    p["up1phi"] = _tconv_params(keys[10], 28, 28)  # upsample1_phi (+ ReLU)
    return p


# ----------------------------------------------------------------------------
# GAP_net forward
# ----------------------------------------------------------------------------

def gap_net_forward(params, y, Phi, Phi_s):
    """y: (B,H,W), Phi: (B,H,W,28), Phi_s: (B,H,W).  Returns [x] in NHWC."""
    y1 = y.astype(jnp.float32)
    Phi_b = Phi.astype(jnp.bfloat16)
    Phi_s1 = Phi_s.astype(jnp.float32)

    # x = At(y,Phi);  x += At((y1 - A(x,Phi))/Phi_s, Phi);  x = shift_back(x)  (fused)
    x = gap_project(None, Phi_b, y1, Phi_s1, pre_shift=False)
    x = unet_apply(params["unet1"], x)

    x = maxpool2x2(x)
    Phi_lo = maxpool2x2(Phi_b)
    y2 = maxpool2x2_2d(y1)
    Phi_s_lo = phi_sum_guard(Phi_lo)

    for name in ("unet2", "unet3", "unet4", "unet5", "unet6"):
        x = gap_project(x, Phi_lo, y2, Phi_s_lo, pre_shift=True)
        x = unet2_apply(params[name], x)

    # NOTE: the PyTorch reference omits shift() before this projection (as written).
    x = gap_project(x, Phi_lo, y2, Phi_s_lo, pre_shift=False)
    x = unet2_apply(params["unet7"], x)

    x = gap_project(x, Phi_lo, y2, Phi_s_lo, pre_shift=True)
    x = unet2_apply(params["unet8"], x)

    x = conv_transpose_2x2(x, *params["up1x"], relu=False)             # upsample1_x
    Phi_up = conv_transpose_2x2(Phi_lo, *params["up1phi"], relu=True)  # upsample1_phi
    Phi_s_up = phi_sum_guard(Phi_up)

    x = gap_project(x, Phi_up, y1, Phi_s_up, pre_shift=True)
    x = unet_apply(params["unet9"], x)

    return [x.astype(jnp.float32)[:, :, 0:256, :]]  # W crop (== x[:, :, :, 0:256] NCHW)


# ----------------------------------------------------------------------------
# Pure-JAX references for spot checks
# ----------------------------------------------------------------------------

def _gap_project_ref(x, phi, y, phi_s, pre_shift, step=_SHIFT_STEP):
    phi = phi.astype(jnp.float32)
    y = y.astype(jnp.float32)
    phi_s = phi_s.astype(jnp.float32)
    x0 = y[..., None] * phi if x is None else x.astype(jnp.float32)
    xs = _roll_per_channel_ref(x0, step) if pre_shift else x0
    yb = jnp.sum(xs * phi, axis=-1)
    upd = ((y - yb) / phi_s)[..., None] * phi
    return _roll_per_channel_ref(xs + upd, -step)


def _double_conv_ref(x, w1_4, b1, w2_4, b2):
    def conv(v, w4, b):
        out = jax.lax.conv_general_dilated(
            v, w4, (1, 1), "SAME", dimension_numbers=("NHWC", "HWIO", "NHWC"))
        return jnp.maximum(out + b, 0.0)
    w1r = w1_4.astype(jnp.bfloat16).astype(jnp.float32)
    w2r = w2_4.astype(jnp.bfloat16).astype(jnp.float32)
    return conv(conv(x, w1r, b1), w2r, b2)


# ----------------------------------------------------------------------------

if __name__ == "__main__":
    key = jax.random.PRNGKey(0)
    kp, ky, kphi, kchk = jax.random.split(key, 4)

    B, H, W, C = 2, 16, 16, 28   # small shapes; H, W divisible by 4 for the U-Nets

    # Probe pltpu.roll support at the widths this run will use (safe fallback
    # kicks in automatically if a probe fails on the current generation).
    configure_for_tpu(W, channels=C)

    params = init_gap_net(kp)
    Phi = jax.random.uniform(kphi, (B, H, W, C), jnp.float32)
    y = jax.random.uniform(ky, (B, H, W), jnp.float32)
    Phi_s = jnp.sum(Phi, axis=-1)
    Phi_s = jnp.where(Phi_s == 0.0, 1.0, Phi_s)

    # ---- spot check 1: fused double_conv vs lax.conv reference ----
    kw1, kw2, kxin, kx2 = jax.random.split(kchk, 4)
    Ci, Cm, Co = 28, 32, 32
    w1_4 = jax.random.normal(kw1, (3, 3, Ci, Cm), jnp.float32) / np.sqrt(9 * Ci)
    w2_4 = jax.random.normal(kw2, (3, 3, Cm, Co), jnp.float32) / np.sqrt(9 * Cm)
    b1c = jnp.zeros((Cm,), jnp.float32)
    b2c = jnp.zeros((Co,), jnp.float32)
    xin = jax.random.normal(kxin, (1, H, W, Ci), jnp.float32).astype(jnp.bfloat16)
    got_dc = fused_double_conv(xin, _pack_conv3x3(w1_4), b1c,
                               _pack_conv3x3(w2_4), b2c).astype(jnp.float32)
    ref_dc = _double_conv_ref(xin.astype(jnp.float32), w1_4, b1c, w2_4, b2c)
    err_dc = float(jnp.max(jnp.abs(got_dc - ref_dc)))
    assert err_dc < 0.1, f"double_conv mismatch: max abs err {err_dc}"

    # ---- spot check 2: fused GAP projection (both variants) vs jnp reference ----
    Phi_bf = Phi.astype(jnp.bfloat16)
    got_g1 = gap_project(None, Phi_bf, y, Phi_s, pre_shift=False).astype(jnp.float32)
    ref_g1 = _gap_project_ref(None, Phi_bf, y, Phi_s, pre_shift=False)
    err_g1 = float(jnp.max(jnp.abs(got_g1 - ref_g1)))
    assert err_g1 < 0.08, f"gap_project(pre_shift=False) mismatch: {err_g1}"

    Phi_lo = maxpool2x2(Phi_bf)
    y2c = maxpool2x2_2d(y)
    Phi_s_lo = phi_sum_guard(Phi_lo)
    x_lo = jax.random.uniform(kx2, (B, H // 2, W // 2, C), jnp.float32).astype(jnp.bfloat16)
    got_g2 = gap_project(x_lo, Phi_lo, y2c, Phi_s_lo, pre_shift=True).astype(jnp.float32)
    ref_g2 = _gap_project_ref(x_lo, Phi_lo, y2c, Phi_s_lo, pre_shift=True)
    err_g2 = float(jnp.max(jnp.abs(got_g2 - ref_g2)))
    assert err_g2 < 0.08, f"gap_project(pre_shift=True) mismatch: {err_g2}"

    # ---- full forward ----
    out_list = jax.jit(gap_net_forward)(params, y, Phi, Phi_s)
    out = jax.block_until_ready(out_list[0])
    assert out.shape == (B, H, min(W, 256), C), out.shape
    assert bool(jnp.all(jnp.isfinite(out)))
    print("KERNEL_OK")
</pallas_src>

<mosaic_0001>
module attributes {stable_mosaic.version = 11 : i64} {
  func.func @k(%arg0: memref<8x4x84xbf16, #tpu.memory_space<vmem>>, %arg1: memref<8x4x84xbf16, #tpu.memory_space<vmem>>) attributes {dimension_semantics = [], scalar_prefetch = 0 : i64, scratch_operands = 0 : i64, tpu.core_type = #tpu.core_type<tc>} {
    %c0 = arith.constant 0 : index
    %c0_0 = arith.constant 0 : index
    %c0_1 = arith.constant 0 : index
    %0 = vector.load %arg0[%c0, %c0_0, %c0_1] : memref<8x4x84xbf16, #tpu.memory_space<vmem>>, vector<8x4x84xbf16>
    %c1_i32 = arith.constant 1 : i32
    %1 = tpu.dynamic_rotate %0 by %c1_i32 dim 1 : vector<8x4x84xbf16>, i32 -> vector<8x4x84xbf16>
    %c0_2 = arith.constant 0 : index
    %c0_3 = arith.constant 0 : index
    %c0_4 = arith.constant 0 : index
    %2 = vector.load %arg1[%c0_2, %c0_3, %c0_4] : memref<8x4x84xbf16, #tpu.memory_space<vmem>>, vector<8x4x84xbf16>
    tpu.vector_store %arg1[%c0_2, %c0_3, %c0_4], %1 {strides = array<i32>} : memref<8x4x84xbf16, #tpu.memory_space<vmem>>, vector<8x4x84xbf16>,
    return
  }
}

module attributes {stable_mosaic.version = 11 : i64} {
  func.func @k(%arg0: memref<8x8x84xbf16, #tpu.memory_space<vmem>>, %arg1: memref<8x8x84xbf16, #tpu.memory_space<vmem>>) attributes {dimension_semantics = [], scalar_prefetch = 0 : i64, scratch_operands = 0 : i64, tpu.core_type = #tpu.core_type<tc>} {
    %c0 = arith.constant 0 : index
    %c0_0 = arith.constant 0 : index
    %c0_1 = arith.constant 0 : index
    %0 = vector.load %arg0[%c0, %c0_0, %c0_1] : memref<8x8x84xbf16, #tpu.memory_space<vmem>>, vector<8x8x84xbf16>
    %c1_i32 = arith.constant 1 : i32
    %1 = tpu.dynamic_rotate %0 by %c1_i32 dim 1 : vector<8x8x84xbf16>, i32 -> vector<8x8x84xbf16>
    %c0_2 = arith.constant 0 : index
    %c0_3 = arith.constant 0 : index
    %c0_4 = arith.constant 0 : index
    %2 = vector.load %arg1[%c0_2, %c0_3, %c0_4] : memref<8x8x84xbf16, #tpu.memory_space<vmem>>, vector<8x8x84xbf16>
    tpu.vector_store %arg1[%c0_2, %c0_3, %c0_4], %1 {strides = array<i32>} : memref<8x8x84xbf16, #tpu.memory_space<vmem>>, vector<8x8x84xbf16>,
    return
  }
}

module attributes {stable_mosaic.version = 11 : i64} {
  func.func @k(%arg0: memref<8x16x84xbf16, #tpu.memory_space<vmem>>, %arg1: memref<8x16x84xbf16, #tpu.memory_space<vmem>>) attributes {dimension_semantics = [], scalar_prefetch = 0 : i64, scratch_operands = 0 : i64, tpu.core_type = #tpu.core_type<tc>} {
    %c0 = arith.constant 0 : index
    %c0_0 = arith.constant 0 : index
    %c0_1 = arith.constant 0 : index
    %0 = vector.load %arg0[%c0, %c0_0, %c0_1] : memref<8x16x84xbf16, #tpu.memory_space<vmem>>, vector<8x16x84xbf16>
    %c1_i32 = arith.constant 1 : i32
    %1 = tpu.dynamic_rotate %0 by %c1_i32 dim 1 : vector<8x16x84xbf16>, i32 -> vector<8x16x84xbf16>
    %c0_2 = arith.constant 0 : index
    %c0_3 = arith.constant 0 : index
    %c0_4 = arith.constant 0 : index
    %2 = vector.load %arg1[%c0_2, %c0_3, %c0_4] : memref<8x16x84xbf16, #tpu.memory_space<vmem>>, vector<8x16x84xbf16>
    tpu.vector_store %arg1[%c0_2, %c0_3, %c0_4], %1 {strides = array<i32>} : memref<8x16x84xbf16, #tpu.memory_space<vmem>>, vector<8x16x84xbf16>,
    return
  }
}

module attributes {stable_mosaic.version = 11 : i64} {
  func.func @k(%arg0: memref<8x8x28xf32, #tpu.memory_space<vmem>>, %arg1: memref<8x8x28xf32, #tpu.memory_space<vmem>>) attributes {dimension_semantics = [], scalar_prefetch = 0 : i64, scratch_operands = 0 : i64, tpu.core_type = #tpu.core_type<tc>} {
    %c0 = arith.constant 0 : index
    %c0_0 = arith.constant 0 : index
    %c0_1 = arith.constant 0 : index
    %0 = vector.load %arg0[%c0, %c0_0, %c0_1] : memref<8x8x28xf32, #tpu.memory_space<vmem>>, vector<8x8x28xf32>
    %c0_i32 = arith.constant 0 : i32
    %1 = tpu.dynamic_rotate %0 by %c0_i32 dim 1 {stride = 2 : si32, stride_dimension = 2 : si32} : vector<8x8x28xf32>, i32 -> vector<8x8x28xf32>
    %c0_2 = arith.constant 0 : index
    %c0_3 = arith.constant 0 : index
    %c0_4 = arith.constant 0 : index
    %2 = vector.load %arg1[%c0_2, %c0_3, %c0_4] : memref<8x8x28xf32, #tpu.memory_space<vmem>>, vector<8x8x28xf32>
    tpu.vector_store %arg1[%c0_2, %c0_3, %c0_4], %1 {strides = array<i32>} : memref<8x8x28xf32, #tpu.memory_space<vmem>>, vector<8x8x28xf32>,
    return
  }
}

module attributes {stable_mosaic.version = 11 : i64} {
  func.func @k(%arg0: memref<8x8x28xf32, #tpu.memory_space<vmem>>, %arg1: memref<8x8x28xf32, #tpu.memory_space<vmem>>) attributes {dimension_semantics = [], scalar_prefetch = 0 : i64, scratch_operands = 0 : i64, tpu.core_type = #tpu.core_type<tc>} {
    %c0 = arith.constant 0 : index
    %c0_0 = arith.constant 0 : index
    %c0_1 = arith.constant 0 : index
    %0 = vector.load %arg0[%c0, %c0_0, %c0_1] : memref<8x8x28xf32, #tpu.memory_space<vmem>>, vector<8x8x28xf32>
    %c0_i32 = arith.constant 0 : i32
    %1 = tpu.dynamic_rotate %0 by %c0_i32 dim 1 {stride = 6 : si32, stride_dimension = 2 : si32} : vector<8x8x28xf32>, i32 -> vector<8x8x28xf32>
    %c0_2 = arith.constant 0 : index
    %c0_3 = arith.constant 0 : index
    %c0_4 = arith.constant 0 : index
    %2 = vector.load %arg1[%c0_2, %c0_3, %c0_4] : memref<8x8x28xf32, #tpu.memory_space<vmem>>, vector<8x8x28xf32>
    tpu.vector_store %arg1[%c0_2, %c0_3, %c0_4], %1 {strides = array<i32>} : memref<8x8x28xf32, #tpu.memory_space<vmem>>, vector<8x8x28xf32>,
    return
  }
}

module attributes {stable_mosaic.version = 11 : i64} {
  func.func @k(%arg0: memref<8x16x28xf32, #tpu.memory_space<vmem>>, %arg1: memref<8x16x28xf32, #tpu.memory_space<vmem>>) attributes {dimension_semantics = [], scalar_prefetch = 0 : i64, scratch_operands = 0 : i64, tpu.core_type = #tpu.core_type<tc>} {
    %c0 = arith.constant 0 : index
    %c0_0 = arith.constant 0 : index
    %c0_1 = arith.constant 0 : index
    %0 = vector.load %arg0[%c0, %c0_0, %c0_1] : memref<8x16x28xf32, #tpu.memory_space<vmem>>, vector<8x16x28xf32>
    %c0_i32 = arith.constant 0 : i32
    %1 = tpu.dynamic_rotate %0 by %c0_i32 dim 1 {stride = 2 : si32, stride_dimension = 2 : si32} : vector<8x16x28xf32>, i32 -> vector<8x16x28xf32>
    %c0_2 = arith.constant 0 : index
    %c0_3 = arith.constant 0 : index
    %c0_4 = arith.constant 0 : index
    %2 = vector.load %arg1[%c0_2, %c0_3, %c0_4] : memref<8x16x28xf32, #tpu.memory_space<vmem>>, vector<8x16x28xf32>
    tpu.vector_store %arg1[%c0_2, %c0_3, %c0_4], %1 {strides = array<i32>} : memref<8x16x28xf32, #tpu.memory_space<vmem>>, vector<8x16x28xf32>,
    return
  }
}

module attributes {stable_mosaic.version = 11 : i64} {
  func.func @k(%arg0: memref<8x16x28xf32, #tpu.memory_space<vmem>>, %arg1: memref<8x16x28xf32, #tpu.memory_space<vmem>>) attributes {dimension_semantics = [], scalar_prefetch = 0 : i64, scratch_operands = 0 : i64, tpu.core_type = #tpu.core_type<tc>} {
    %c0 = arith.constant 0 : index
    %c0_0 = arith.constant 0 : index
    %c0_1 = arith.constant 0 : index
    %0 = vector.load %arg0[%c0, %c0_0, %c0_1] : memref<8x16x28xf32, #tpu.memory_space<vmem>>, vector<8x16x28xf32>
    %c0_i32 = arith.constant 0 : i32
    %1 = tpu.dynamic_rotate %0 by %c0_i32 dim 1 {stride = 14 : si32, stride_dimension = 2 : si32} : vector<8x16x28xf32>, i32 -> vector<8x16x28xf32>
    %c0_2 = arith.constant 0 : index
    %c0_3 = arith.constant 0 : index
    %c0_4 = arith.constant 0 : index
    %2 = vector.load %arg1[%c0_2, %c0_3, %c0_4] : memref<8x16x28xf32, #tpu.memory_space<vmem>>, vector<8x16x28xf32>
    tpu.vector_store %arg1[%c0_2, %c0_3, %c0_4], %1 {strides = array<i32>} : memref<8x16x28xf32, #tpu.memory_space<vmem>>, vector<8x16x28xf32>,
    return
  }
}

module attributes {stable_mosaic.version = 11 : i64} {
  func.func @_double_conv_kernel(%arg0: i32, %arg1: i32, %arg2: memref<1x8x16x28xbf16, #tpu.memory_space<vmem>>, %arg3: memref<1x2x16x28xbf16, #tpu.memory_space<vmem>>, %arg4: memref<1x2x16x28xbf16, #tpu.memory_space<vmem>>, %arg5: memref<3x84x32xbf16, #tpu.memory_space<vmem>>, %arg6: memref<1x32xf32, #tpu.memory_space<vmem>>, %arg7: memref<3x96x32xbf16, #tpu.memory_space<vmem>>, %arg8: memref<1x32xf32, #tpu.memory_space<vmem>>, %arg9: memref<1x8x16x32xbf16, #tpu.memory_space<vmem>>, %arg10: memref<10x16x32xbf16, #tpu.memory_space<vmem>>) attributes {dimension_semantics = [#tpu.dimension_semantics<parallel>, #tpu.dimension_semantics<parallel>], iteration_bounds = array<i64: 2, 1>, scalar_prefetch = 0 : i64, scratch_operands = 1 : i64, tpu.core_type = #tpu.core_type<tc>, window_params = [{transform_indices = @transform_0, window_bounds = array<i64: 1, 8, 16, 28>}, {transform_indices = @transform_1, window_bounds = array<i64: 1, 2, 16, 28>}, {transform_indices = @transform_2, window_bounds = array<i64: 1, 2, 16, 28>}, {pipeline_mode = #tpu.pipeline_mode<synchronous>, transform_indices = @transform_3, window_bounds = array<i64: 3, 84, 32>}, {pipeline_mode = #tpu.pipeline_mode<synchronous>, transform_indices = @transform_4, window_bounds = array<i64: 1, 32>}, {pipeline_mode = #tpu.pipeline_mode<synchronous>, transform_indices = @transform_5, window_bounds = array<i64: 3, 96, 32>}, {pipeline_mode = #tpu.pipeline_mode<synchronous>, transform_indices = @transform_6, window_bounds = array<i64: 1, 32>}, {transform_indices = @transform_7, window_bounds = array<i64: 1, 8, 16, 32>}]} {
    %c0 = arith.constant 0 : index
    %c0_0 = arith.constant 0 : index
    %c0_1 = arith.constant 0 : index
    %c0_2 = arith.constant 0 : index
    %0 = vector.load %arg3[%c0, %c0_0, %c0_1, %c0_2] : memref<1x2x16x28xbf16, #tpu.memory_space<vmem>>, vector<1x2x16x28xbf16>
    %1 = vector.shape_cast %0 : vector<1x2x16x28xbf16> to vector<2x16x28xbf16>
    %c0_i32 = arith.constant 0 : i32
    %2 = arith.cmpi eq, %arg0, %c0_i32 : i32
    %cst = arith.constant 0.000000e+00 : bf16
    %3 = vector.broadcast %cst : bf16 to vector<2x16x28xbf16>
    %4 = arith.select %2, %3, %1 : vector<2x16x28xbf16>
    %c0_3 = arith.constant 0 : index
    %c0_4 = arith.constant 0 : index
    %c0_5 = arith.constant 0 : index
    %c0_6 = arith.constant 0 : index
    %5 = vector.load %arg4[%c0_3, %c0_4, %c0_5, %c0_6] : memref<1x2x16x28xbf16, #tpu.memory_space<vmem>>, vector<1x2x16x28xbf16>
    %6 = vector.shape_cast %5 : vector<1x2x16x28xbf16> to vector<2x16x28xbf16>
    %c1_i32 = arith.constant 1 : i32
    %7 = arith.cmpi eq, %arg0, %c1_i32 : i32
    %cst_7 = arith.constant 0.000000e+00 : bf16
    %8 = vector.broadcast %cst_7 : bf16 to vector<2x16x28xbf16>
    %9 = arith.select %7, %8, %6 : vector<2x16x28xbf16>
    %c0_8 = arith.constant 0 : index
    %c0_9 = arith.constant 0 : index
    %c0_10 = arith.constant 0 : index
    %c0_11 = arith.constant 0 : index
    %10 = vector.load %arg2[%c0_8, %c0_9, %c0_10, %c0_11] : memref<1x8x16x28xbf16, #tpu.memory_space<vmem>>, vector<1x8x16x28xbf16>
    %11 = vector.shape_cast %10 : vector<1x8x16x28xbf16> to vector<8x16x28xbf16>
    %12 = tpu.concatenate %4, %11, %9 in 0 : vector<2x16x28xbf16>, vector<8x16x28xbf16>, vector<2x16x28xbf16> -> vector<12x16x28xbf16>
    %c0_12 = arith.constant 0 : index
    %c0_13 = arith.constant 0 : index
    %c0_14 = arith.constant 0 : index
    %13 = vector.load %arg5[%c0_12, %c0_13, %c0_14] : memref<3x84x32xbf16, #tpu.memory_space<vmem>>, vector<3x84x32xbf16>
    %c0_15 = arith.constant 0 : index
    %c0_16 = arith.constant 0 : index
    %14 = vector.load %arg6[%c0_15, %c0_16] : memref<1x32xf32, #tpu.memory_space<vmem>>, vector<1x32xf32>
    %15 = vector.extract_strided_slice %12 {offsets = [0, 0, 0], sizes = [10, 16, 28], strides = [1, 1, 1]} : vector<12x16x28xbf16> to vector<10x16x28xbf16>
    %16 = vector.extract_strided_slice %12 {offsets = [1, 0, 0], sizes = [10, 16, 28], strides = [1, 1, 1]} : vector<12x16x28xbf16> to vector<10x16x28xbf16>
    %17 = vector.extract_strided_slice %12 {offsets = [2, 0, 0], sizes = [10, 16, 28], strides = [1, 1, 1]} : vector<12x16x28xbf16> to vector<10x16x28xbf16>
    %18 = tpu.concatenate %15, %16, %17 in 2 : vector<10x16x28xbf16>, vector<10x16x28xbf16>, vector<10x16x28xbf16> -> vector<10x16x84xbf16>
    %cst_17 = arith.constant 0.000000e+00 : bf16
    %19 = vector.broadcast %cst_17 : bf16 to vector<10x1x84xbf16>
    %20 = vector.extract_strided_slice %18 {offsets = [0, 0, 0], sizes = [10, 15, 84], strides = [1, 1, 1]} : vector<10x16x84xbf16> to vector<10x15x84xbf16>
    %21 = tpu.concatenate %19, %20 in 1 : vector<10x1x84xbf16>, vector<10x15x84xbf16> -> vector<10x16x84xbf16>
    %cst_18 = arith.constant 0.000000e+00 : bf16
    %22 = vector.broadcast %cst_18 : bf16 to vector<10x1x84xbf16>
    %23 = vector.extract_strided_slice %18 {offsets = [0, 1, 0], sizes = [10, 15, 84], strides = [1, 1, 1]} : vector<10x16x84xbf16> to vector<10x15x84xbf16>
    %24 = tpu.concatenate %23, %22 in 1 : vector<10x15x84xbf16>, vector<10x1x84xbf16> -> vector<10x16x84xbf16>
    %25 = vector.shape_cast %21 : vector<10x16x84xbf16> to vector<160x84xbf16>
    %26 = vector.extract_strided_slice %13 {offsets = [0, 0, 0], sizes = [1, 84, 32], strides = [1, 1, 1]} : vector<3x84x32xbf16> to vector<1x84x32xbf16>
    %27 = vector.shape_cast %26 : vector<1x84x32xbf16> to vector<84x32xbf16>
    %cst_19 = arith.constant dense<0.000000e+00> : vector<160x32xf32>
    %28 = tpu.matmul %25, %27, %cst_19 {dimension_numbers = #tpu.dot_dimension_numbers<[1], [0], [0], [1], [0, 0, 1, 1], [], []>} : vector<160x84xbf16>, vector<84x32xbf16>, vector<160x32xf32> -> vector<160x32xf32>
    %29 = vector.shape_cast %18 : vector<10x16x84xbf16> to vector<160x84xbf16>
    %30 = vector.extract_strided_slice %13 {offsets = [1, 0, 0], sizes = [1, 84, 32], strides = [1, 1, 1]} : vector<3x84x32xbf16> to vector<1x84x32xbf16>
    %31 = vector.shape_cast %30 : vector<1x84x32xbf16> to vector<84x32xbf16>
    %cst_20 = arith.constant dense<0.000000e+00> : vector<160x32xf32>
    %32 = tpu.matmul %29, %31, %cst_20 {dimension_numbers = #tpu.dot_dimension_numbers<[1], [0], [0], [1], [0, 0, 1, 1], [], []>} : vector<160x84xbf16>, vector<84x32xbf16>, vector<160x32xf32> -> vector<160x32xf32>
    %33 = arith.addf %28, %32 : vector<160x32xf32>
    %34 = vector.shape_cast %24 : vector<10x16x84xbf16> to vector<160x84xbf16>
    %35 = vector.extract_strided_slice %13 {offsets = [2, 0, 0], sizes = [1, 84, 32], strides = [1, 1, 1]} : vector<3x84x32xbf16> to vector<1x84x32xbf16>
    %36 = vector.shape_cast %35 : vector<1x84x32xbf16> to vector<84x32xbf16>
    %cst_21 = arith.constant dense<0.000000e+00> : vector<160x32xf32>
    %37 = tpu.matmul %34, %36, %cst_21 {dimension_numbers = #tpu.dot_dimension_numbers<[1], [0], [0], [1], [0, 0, 1, 1], [], []>} : vector<160x84xbf16>, vector<84x32xbf16>, vector<160x32xf32> -> vector<160x32xf32>
    %38 = arith.addf %33, %37 : vector<160x32xf32>
    %39 = vector.broadcast %14 : vector<1x32xf32> to vector<160x32xf32>
    %40 = arith.addf %38, %39 : vector<160x32xf32>
    %cst_22 = arith.constant 0.000000e+00 : f32
    %41 = vector.broadcast %cst_22 : f32 to vector<160x32xf32>
    %42 = arith.maximumf %40, %41 : vector<160x32xf32>
    %43 = vector.shape_cast %42 : vector<160x32xf32> to vector<10x16x32xf32>
    %44 = tpu.iota {dimensions = array<i32: 0>} : vector<10x1x1xi32>
    %c8_i32 = arith.constant 8 : i32
    %45 = arith.muli %arg0, %c8_i32 : i32
    %c1_i32_23 = arith.constant 1 : i32
    %46 = arith.subi %45, %c1_i32_23 : i32
    %47 = vector.broadcast %46 : i32 to vector<10x1x1xi32>
    %48 = arith.addi %47, %44 : vector<10x1x1xi32>
    %c0_i32_24 = arith.constant 0 : i32
    %49 = vector.broadcast %c0_i32_24 : i32 to vector<10x1x1xi32>
    %50 = arith.cmpi sge, %48, %49 : vector<10x1x1xi32>
    %c16_i32 = arith.constant 16 : i32
    %51 = vector.broadcast %c16_i32 : i32 to vector<10x1x1xi32>
    %52 = arith.cmpi slt, %48, %51 : vector<10x1x1xi32>
    %53 = arith.andi %50, %52 : vector<10x1x1xi1>
    %cst_25 = arith.constant 0.000000e+00 : f32
    %54 = vector.shape_cast %53 : vector<10x1x1xi1> to vector<10x1x1xi1>
    %55 = vector.broadcast %54 : vector<10x1x1xi1> to vector<10x16x32xi1>
    %56 = vector.broadcast %cst_25 : f32 to vector<10x16x32xf32>
    %57 = arith.select %55, %43, %56 : vector<10x16x32xi1>, vector<10x16x32xf32>
    %58 = arith.truncf %57 : vector<10x16x32xf32> to vector<10x16x32xbf16>
    %c0_26 = arith.constant 0 : index
    %c0_27 = arith.constant 0 : index
    %c0_28 = arith.constant 0 : index
    %59 = vector.load %arg10[%c0_26, %c0_27, %c0_28] : memref<10x16x32xbf16, #tpu.memory_space<vmem>>, vector<10x16x32xbf16>
    tpu.vector_store %arg10[%c0_26, %c0_27, %c0_28], %58 {strides = array<i32>} : memref<10x16x32xbf16, #tpu.memory_space<vmem>>, vector<10x16x32xbf16>,
    %c0_29 = arith.constant 0 : index
    %c0_30 = arith.constant 0 : index
    %c0_31 = arith.constant 0 : index
    %60 = vector.load %arg10[%c0_29, %c0_30, %c0_31] : memref<10x16x32xbf16, #tpu.memory_space<vmem>>, vector<10x16x32xbf16>
    %c0_32 = arith.constant 0 : index
    %c0_33 = arith.constant 0 : index
    %c0_34 = arith.constant 0 : index
    %61 = vector.load %arg7[%c0_32, %c0_33, %c0_34] : memref<3x96x32xbf16, #tpu.memory_space<vmem>>, vector<3x96x32xbf16>
    %c0_35 = arith.constant 0 : index
    %c0_36 = arith.constant 0 : index
    %62 = vector.load %arg8[%c0_35, %c0_36] : memref<1x32xf32, #tpu.memory_space<vmem>>, vector<1x32xf32>
    %63 = vector.extract_strided_slice %60 {offsets = [0, 0, 0], sizes = [8, 16, 32], strides = [1, 1, 1]} : vector<10x16x32xbf16> to vector<8x16x32xbf16>
    %64 = vector.extract_strided_slice %60 {offsets = [1, 0, 0], sizes = [8, 16, 32], strides = [1, 1, 1]} : vector<10x16x32xbf16> to vector<8x16x32xbf16>
    %65 = vector.extract_strided_slice %60 {offsets = [2, 0, 0], sizes = [8, 16, 32], strides = [1, 1, 1]} : vector<10x16x32xbf16> to vector<8x16x32xbf16>
    %66 = tpu.concatenate %63, %64, %65 in 2 : vector<8x16x32xbf16>, vector<8x16x32xbf16>, vector<8x16x32xbf16> -> vector<8x16x96xbf16>
    %cst_37 = arith.constant 0.000000e+00 : bf16
    %67 = vector.broadcast %cst_37 : bf16 to vector<8x1x96xbf16>
    %68 = vector.extract_strided_slice %66 {offsets = [0, 0, 0], sizes = [8, 15, 96], strides = [1, 1, 1]} : vector<8x16x96xbf16> to vector<8x15x96xbf16>
    %69 = tpu.concatenate %67, %68 in 1 : vector<8x1x96xbf16>, vector<8x15x96xbf16> -> vector<8x16x96xbf16>
    %cst_38 = arith.constant 0.000000e+00 : bf16
    %70 = vector.broadcast %cst_38 : bf16 to vector<8x1x96xbf16>
    %71 = vector.extract_strided_slice %66 {offsets = [0, 1, 0], sizes = [8, 15, 96], strides = [1, 1, 1]} : vector<8x16x96xbf16> to vector<8x15x96xbf16>
    %72 = tpu.concatenate %71, %70 in 1 : vector<8x15x96xbf16>, vector<8x1x96xbf16> -> vector<8x16x96xbf16>
    %73 = vector.shape_cast %69 : vector<8x16x96xbf16> to vector<128x96xbf16>
    %74 = vector.extract_strided_slice %61 {offsets = [0, 0, 0], sizes = [1, 96, 32], strides = [1, 1, 1]} : vector<3x96x32xbf16> to vector<1x96x32xbf16>
    %75 = vector.shape_cast %74 : vector<1x96x32xbf16> to vector<96x32xbf16>
    %cst_39 = arith.constant dense<0.000000e+00> : vector<128x32xf32>
    %76 = tpu.matmul %73, %75, %cst_39 {dimension_numbers = #tpu.dot_dimension_numbers<[1], [0], [0], [1], [0, 0, 1, 1], [], []>} : vector<128x96xbf16>, vector<96x32xbf16>, vector<128x32xf32> -> vector<128x32xf32>
    %77 = vector.shape_cast %66 : vector<8x16x96xbf16> to vector<128x96xbf16>
    %78 = vector.extract_strided_slice %61 {offsets = [1, 0, 0], sizes = [1, 96, 32], strides = [1, 1, 1]} : vector<3x96x32xbf16> to vector<1x96x32xbf16>
    %79 = vector.shape_cast %78 : vector<1x96x32xbf16> to vector<96x32xbf16>
    %cst_40 = arith.constant dense<0.000000e+00> : vector<128x32xf32>
    %80 = tpu.matmul %77, %79, %cst_40 {dimension_numbers = #tpu.dot_dimension_numbers<[1], [0], [0], [1], [0, 0, 1, 1], [], []>} : vector<128x96xbf16>, vector<96x32xbf16>, vector<128x32xf32> -> vector<128x32xf32>
    %81 = arith.addf %76, %80 : vector<128x32xf32>
    %82 = vector.shape_cast %72 : vector<8x16x96xbf16> to vector<128x96xbf16>
    %83 = vector.extract_strided_slice %61 {offsets = [2, 0, 0], sizes = [1, 96, 32], strides = [1, 1, 1]} : vector<3x96x32xbf16> to vector<1x96x32xbf16>
    %84 = vector.shape_cast %83 : vector<1x96x32xbf16> to vector<96x32xbf16>
    %cst_41 = arith.constant dense<0.000000e+00> : vector<128x32xf32>
    %85 = tpu.matmul %82, %84, %cst_41 {dimension_numbers = #tpu.dot_dimension_numbers<[1], [0], [0], [1], [0, 0, 1, 1], [], []>} : vector<128x96xbf16>, vector<96x32xbf16>, vector<128x32xf32> -> vector<128x32xf32>
    %86 = arith.addf %81, %85 : vector<128x32xf32>
    %87 = vector.broadcast %62 : vector<1x32xf32> to vector<128x32xf32>
    %88 = arith.addf %86, %87 : vector<128x32xf32>
    %cst_42 = arith.constant 0.000000e+00 : f32
    %89 = vector.broadcast %cst_42 : f32 to vector<128x32xf32>
    %90 = arith.maximumf %88, %89 : vector<128x32xf32>
    %91 = vector.shape_cast %90 : vector<128x32xf32> to vector<8x16x32xf32>
    %92 = arith.truncf %91 : vector<8x16x32xf32> to vector<8x16x32xbf16>
    %c0_43 = arith.constant 0 : index
    %c0_44 = arith.constant 0 : index
    %c0_45 = arith.constant 0 : index
    %c0_46 = arith.constant 0 : index
    %93 = vector.load %arg9[%c0_43, %c0_44, %c0_45, %c0_46] : memref<1x8x16x32xbf16, #tpu.memory_space<vmem>>, vector<1x8x16x32xbf16>
    %94 = vector.shape_cast %93 : vector<1x8x16x32xbf16> to vector<8x16x32xbf16>
    %95 = vector.shape_cast %92 : vector<8x16x32xbf16> to vector<1x8x16x32xbf16>
    tpu.vector_store %arg9[%c0_43, %c0_44, %c0_45, %c0_46], %95 {strides = array<i32>} : memref<1x8x16x32xbf16, #tpu.memory_space<vmem>>, vector<1x8x16x32xbf16>,
    return
  }
  func.func @transform_0(%arg0: i32, %arg1: i32) -> (i32, i32, i32, i32) {
    %c0_i32 = arith.constant 0 : i32
    %c0_i32_0 = arith.constant 0 : i32
    %c0_i32_1 = arith.constant 0 : i32
    return %arg1, %arg0, %c0_i32, %c0_i32_0 : i32, i32, i32, i32
  }
  func.func @transform_1(%arg0: i32, %arg1: i32) -> (i32, i32, i32, i32) {
    %c4_i32 = arith.constant 4 : i32
    %0 = arith.muli %arg0, %c4_i32 : i32
    %c1_i32 = arith.constant 1 : i32
    %1 = arith.subi %0, %c1_i32 : i32
    %c0_i32 = arith.constant 0 : i32
    %2 = arith.maxsi %1, %c0_i32 : i32
    %c0_i32_0 = arith.constant 0 : i32
    %c0_i32_1 = arith.constant 0 : i32
    %c0_i32_2 = arith.constant 0 : i32
    return %arg1, %2, %c0_i32_0, %c0_i32_1 : i32, i32, i32, i32
  }
  func.func @transform_2(%arg0: i32, %arg1: i32) -> (i32, i32, i32, i32) {
    %c1_i32 = arith.constant 1 : i32
    %0 = arith.addi %arg0, %c1_i32 : i32
    %c4_i32 = arith.constant 4 : i32
    %1 = arith.muli %0, %c4_i32 : i32
    %c7_i32 = arith.constant 7 : i32
    %2 = arith.minsi %1, %c7_i32 : i32
    %c0_i32 = arith.constant 0 : i32
    %c0_i32_0 = arith.constant 0 : i32
    %c0_i32_1 = arith.constant 0 : i32
    return %arg1, %2, %c0_i32, %c0_i32_0 : i32, i32, i32, i32
  }
  func.func @transform_3(%arg0: i32, %arg1: i32) -> (i32, i32, i32) {
    %c0_i32 = arith.constant 0 : i32
    %c0_i32_0 = arith.constant 0 : i32
    %c0_i32_1 = arith.constant 0 : i32
    %c0_i32_2 = arith.constant 0 : i32
    return %c0_i32, %c0_i32_0, %c0_i32_1 : i32, i32, i32
  }
  func.func @transform_4(%arg0: i32, %arg1: i32) -> (i32, i32) {
    %c0_i32 = arith.constant 0 : i32
    %c0_i32_0 = arith.constant 0 : i32
    %c0_i32_1 = arith.constant 0 : i32
    return %c0_i32, %c0_i32_0 : i32, i32
  }
  func.func @transform_5(%arg0: i32, %arg1: i32) -> (i32, i32, i32) {
    %c0_i32 = arith.constant 0 : i32
    %c0_i32_0 = arith.constant 0 : i32
    %c0_i32_1 = arith.constant 0 : i32
    %c0_i32_2 = arith.constant 0 : i32
    return %c0_i32, %c0_i32_0, %c0_i32_1 : i32, i32, i32
  }
  func.func @transform_6(%arg0: i32, %arg1: i32) -> (i32, i32) {
    %c0_i32 = arith.constant 0 : i32
    %c0_i32_0 = arith.constant 0 : i32
    %c0_i32_1 = arith.constant 0 : i32
    return %c0_i32, %c0_i32_0 : i32, i32
  }
  func.func @transform_7(%arg0: i32, %arg1: i32) -> (i32, i32, i32, i32) {
    %c0_i32 = arith.constant 0 : i32
    %c0_i32_0 = arith.constant 0 : i32
    %c0_i32_1 = arith.constant 0 : i32
    return %arg1, %arg0, %c0_i32, %c0_i32_0 : i32, i32, i32, i32
  }
}

</mosaic_0001>

<bundles_post_ra>
// kernel: tpu_custom_call.1
= control target key start
LH: loop header
LB: loop body
LE: loop exit
PB: predicated region body
PF: predicated region fallthrough
CT: control target
= control target key end

     0   :  { %12 = vsyncpa [#allocation4], 0  ;;  %s3703_s0 = inlined_call_operand.vmem [shape: bf16[1,16,16,28], index: 0, kind: input, shape index: {}]   ;;  %s3704_s1 = inlined_call_operand.vmem [shape: bf16[1,16,16,28], index: 1, kind: input, shape index: {}]   ;;  %s3705_s2 = inlined_call_operand.hbm [shape: bf16[1,16,16,28], index: 2, kind: input, shape index: {}]   ;;  %s3706_s3 = inlined_call_operand.vmem [shape: bf16[3,84,32], index: 3, kind: input, shape index: {}]   ;;  %s3707_s4 = inlined_call_operand.vmem [shape: f32[1,32], index: 4, kind: input, shape index: {}]   ;;  %s3708_s5 = inlined_call_operand.vmem [shape: bf16[3,96,32], index: 5, kind: input, shape index: {}]   ;;  %s3709_s6 = inlined_call_operand.vmem [shape: f32[1,32], index: 6, kind: input, shape index: {}]   ;;  %s3710_s7 = inlined_call_operand.hbm [shape: bf16[1,16,16,32], index: 7, kind: output, shape index: {}]  }
   0x1   :  { %14 = vsyncpa [#allocation4 + $0x1], 0 }
   0x2   :  { %15 = vsyncpa [#allocation5], 0 }
   0x3   :  { %17 = vsyncpa [#allocation5 + $0x1], 0  ;;  %s2823_s24 = smov 0   ;;  %s2825_s25 = smov 0  }
   0x4   :  { %s2827_s26 = smov 0   ;;  %s2829_s27 = smov 0  }
   0x5   :  { %s2831_s28 = smov 0   ;;  %s2833_s29 = smov 0  }
   0x6   :  { %s2835_s30 = smov 0   ;;  %s2837_s8 = smov 0  }
   0x7   :  { %s2839_s9 = smov 0  }
   0x8 LB: > { %3714 = sst [smem:[#allocation9_spill]] %s2750_s26  ;;  %s2176_s10 = sadd.s32 4294967295, %s2774_s9   ;;  %s2774_s9 = sphi %s2839_s9, %s23_s9   ;;  %s2770_s8 = sphi %s2837_s8, %s3749_s8   ;;  %s2766_s30 = sphi %s2835_s30, %s3748_s30   ;;  %s2762_s29 = sphi %s2833_s29, %s3754_s29   ;;  %s2758_s28 = sphi %s2831_s28, %s3753_s28   ;;  %s2754_s27 = sphi %s2829_s27, %s3752_s27   ;;  %s2750_s26 = sphi %s2827_s26, %s3746_s26   ;;  %s2746_s25 = sphi %s2825_s25, %s3751_s25   ;;  %s2742_s24 = sphi %s2823_s24, %s3750_s24  }
   0x9   : > { %3715 = sst [smem:[#allocation10_spill]] %s2770_s8  ;;  %s2177_s11 = sadd.s32 4294967294, %s2774_s9  }
   0xa   : > { %s35_s12 = sadd.s32 1, %s2770_s8  ;;  %s2468_s13 = sshll.u32 %s2770_s8, 2 }
   0xb   : > { %p37_p0 = scmp.ge.s32.totalorder %s35_s12, 2  ;;  %s2469_s14 = sadd.s32 4, %s2468_s13 }
   0xc   : > { %p105_p1 = scmp.lt.s32.totalorder %s2469_s14, 7  ;;  %s116_s15 = sadd.s32 1, %s2762_s29 }
   0xd   : > { %s3756_s12 = smov (%p37_p0, %s35_s12), 0  ;;  %p123_p2 = scmp.ne.s32.totalorder %s2762_s29, %s2758_s28 }
   0xe   : > { %3716 = sst [smem:[#allocation11_spill]] %s3756_s12  ;;  %s3758_s14 = smov (!%p105_p1, %s2469_s14), 7 }
   0xf   : > { %s2470_s16 = sshll.u32 %s3756_s12, 2  ;;  %p124_p3 = scmp.eq.s32.totalorder %s2774_s9, 0 }
  0x10   : > { %s2471_s17 = sadd.s32 4, %s2470_s16  ;;  %p129_p5 = scmp.ne.s32.totalorder %s2758_s28, %s2754_s27 }
  0x11   : > { %p109_p4 = scmp.lt.s32.totalorder %s2471_s17, 7  ;;  %p2880_p6 = por %p124_p3, %p123_p2 }
  0x12   : > { %p130_p7 = scmp.eq.s32.totalorder %s2176_s10, 0  ;;  %s224_s20 = ssub.s32 %s2770_s8, %s3756_s12 }
  0x13   : > { %s3760_s17 = smov (!%p109_p4, %s2471_s17), 7  ;;  %p226_p9 = scmp.eq.s32.totalorder %s224_s20, 0 }
  0x14   : > { %p2884_p8 = por %p130_p7, %p129_p5  ;;  %s112_s21 = ssub.s32 %s3758_s14, %s3760_s17 }
  0x15   : > { %p114_p10 = scmp.eq.s32.totalorder %s112_s21, 0  ;;  %s228_s22 = sadd.s32 1, %s2750_s26 }
  0x16   : > { %s2893_s23 = scalar_select %p226_p9, %s2750_s26, %s228_s22  }
  0x17   : > { %s2896_s27 = scalar_select %p114_p10, %s2762_s29, %s116_s15  }
  0x18   : > { %3719 = sst [smem:[#allocation12_spill]] %s2893_s23  ;;  %p238_p11 = scmp.ne.s32.totalorder %s2750_s26, %s2746_s25 }
  0x19   : > { %3720 = sst [smem:[#allocation13_spill]] %s2896_s27  ;;  %p239_p12 = scmp.eq.s32.totalorder %s2176_s10, 1 }
  0x1a   : > { %p244_p13 = scmp.ne.s32.totalorder %s2746_s25, %s2742_s24  ;;  %p245_p0 = scmp.eq.s32.totalorder %s2177_s11, 1 }
  0x1b   : > { %p2904_p1 = por %p239_p12, %p238_p11  ;;  %p2185_p2 = scmp.ge.s32.totalorder %s2774_s9, 2 }
  0x1c   : > { %p2909_p3 = por %p245_p0, %p244_p13  ;;  %p2555_p4 = scmp.lt.s32.totalorder %s2774_s9, 2 }
  0x1d   : > { %s313_s15 = sand.u32 1, %s2762_s29   ;;  %s2475_s17 = sshll.u32 %s3758_s14, 4 }
  0x1e   : > { %s2186_s20 = sshll.u32 %s313_s15, 4  ;;  %s329_s22 = scalar_lea.hbm %s3705_s2, %s2475_s17 }
  0x1f   : > { %s330_s12 = sshll.u32 %s329_s22, 4  ;;  %s317_s11 = scalar_lea.vmem [#allocation3], %s2186_s20  ;;  %s331_s12 = int_to_ptr.hbm [resolvable:$true] %s330_s12 }
  0x20   : > { %s332_s8 = sshll.u32 %s317_s11, 4  ;;  %p2548_p5 = pnand %p2555_p4, %p2880_p6  ;;  %s333_s8 = int_to_ptr.vmem [resolvable:$true] %s332_s8 }
  0x21   : > { %p2191_p7 = scmp.ge.s32.totalorder %s2774_s9, 1  ;;  %p340_p9 = scmp.lt.s32.totalorder %s2774_s9, 3 }
  0x22   : > { %s314_s27 = scalar_lea.sflag [#allocation4], %s313_s15  ;;  %s2776_s23 = smov 64  }
  0x23   : > { %s2777_s26 = smov 4   ;;  %p341_p10 = pnand %p2191_p7, %p340_p9 }
  0x24   : > { %2550 = dma.hbm_to_vmem [thread:$0]  (!%p2548_p5), %s331_s12, 256, %s333_s8, %s314_s27, %s2776_s23, %s2776_s23, %s2777_s26  }
  0x25   : > { %344 = sbr.rel (%p341_p10) target bundleno = 934 (0x3a6), region = 48  ;;  %s346_s14 = sand.u32 (!%p341_p10), 1, %s2758_s28  }
  0x26   : > { %s2192_s10 = sshll.u32 (!%p341_p10), %s346_s14, 4  ;;  %s347_s17 = scalar_lea.sflag (!%p341_p10), [#allocation4], %s346_s14 }
  0x27   : > { %s350_s21 = scalar_lea.vmem (!%p341_p10), [#allocation3], %s2192_s10 }
  0x2a   : > { %2733 = dma.done.wait (%p2884_p8), %s347_s17, 256  }
  0x2b   : > { %2735 = vsyncadd (%p2884_p8), %s347_s17, 4294967040  ;;  %s2929_s18 = sshll.u32 %s2766_s30, 3  ;;  %p459_p11 = scmp.eq.s32.totalorder %s2766_s30, 1  ;;  %v455_v5 = vld [vmem:[%s350_s21] sm:$0xf]  ;;  %vm849_vm2 = vcmask 1041408  }
  0x2c   : > { %p409_p6 = scmp.lt.s32.totalorder %s2929_s18, 15  ;;  %s2197_s26 = sshll.u32 %s2766_s30, 2  ;;  %v456_v6 = vld [vmem:[%s350_s21 + $0x4] sm:$0xf]  ;;  %v457_v9 = vld [vmem:[%s350_s21 + $0x8] sm:$0xf] }
  0x2d   : > { %s460_s12 = scalar_select %p459_p11, 1, 0  ;;  %v458_v10 = vld [vmem:[%s350_s21 + $0xc] sm:$0xf]  ;;  %v504_v24 = vld [vmem:[%s3706_s3 + $0x54] sm:$0x3] }
  0x2e   : > { %s410_s8 = scalar_select %p409_p6, %s2929_s18, 15  ;;  %v816_v27 = vunpack.c.l.b16 %v504_v24  ;;  %v2495_v32 = vld [vmem:[%s3706_s3 + $0x4c] sm:$0xff]  ;;  %v2494_v33 = vld [vmem:[%s3706_s3 + $0x44] sm:$0xff]  ;;  %v2493_v36 = vld [vmem:[%s3706_s3 + $0x3c] sm:$0xff]  ;;  %vm617_vm3 = vcmask 228352   ;;  %vm648_vm4 = vcmask 457728  }
  0x2f   : > { %s2198_s27 = sadd.s32 4294967295, %s2197_s26  ;;  %v461_v0 = vstv %s460_s12  ;;  %p447_p12 = scmp.eq.s32.totalorder %s2766_s30, 0  ;;  %v2492_v40 = vld [vmem:[%s3706_s3 + $0x34] sm:$0xff]  ;;  %v2491_v41 = vld [vmem:[%s3706_s3 + $0x2c] sm:$0xff]  ;;  %v515_v42 = vld [vmem:[%s3706_s3 + $0x80] sm:$0x3] }
  0x30   : > { %s2476_s23 = sshll.u32 %s410_s8, 3  ;;  %p419_p8 = scmp.gt.s32.totalorder %s2198_s27, 0  ;;  %vm2946_vm0 = vcmp.eq.s32.totalorder %v461_v0, 1  ;;  %v822_v29 = vpack.c.b16 %v816_v27, %v816_v27  ;;  %v1058_v43 = vunpack.c.l.b16 %v515_v42  ;;  %v493_v46 = vld [vmem:[%s3706_s3 + $0x28] sm:$0x3]  ;;  %v2500_v47 = vld [vmem:[%s3706_s3 + $0x78] sm:$0xff] }
  0x31   : > { %s2938_s19 = scalar_lea.vmem %s3703_s0, %s2476_s23  ;;  %s2778_s22 = smov 28   ;;  %v463_v7 = vsel %vm2946_vm0, 0, %v455_v5  ;;  %v464_v8 = vsel %vm2946_vm0, 0, %v456_v6  ;;  %v465_v13 = vsel %vm2946_vm0, 0, %v457_v9  ;;  %v466_v14 = vsel %vm2946_vm0, 0, %v458_v10  ;;  %v2499_v51 = vld [vmem:[%s3706_s3 + $0x70] sm:$0xff] }
  0x32   : > { %v2941_v1 = vld [vmem:[%s2938_s19 + $0x28] sm:$0xff]  ;;  %v2944_v2 = vld [vmem:[%s2938_s19 + $0x30] sm:$0xff]  ;;  %v2952_v4 = vld [vmem:[%s2938_s19 + $0x38] sm:$0xff]  ;;  %s3762_s27 = smov (!%p419_p8, %s2198_s27), 0  ;;  %v569_v11 = vunpack.c.l.b16 %v463_v7  ;;  %v570_v12 = vunpack.c.l.b16 %v464_v8  ;;  %s2779_s8 = smov 56   ;;  %v594_v18 = vunpack.c.l.b16 %v465_v13  ;;  %v595_v19 = vunpack.c.l.b16 %v466_v14 }
  0x33   : > { %584 = vrot.lane.b32.xlu0 %v2941_v1, %s2778_s22  ;;  %586 = vrot.lane.b32.xlu1 %v2944_v2, %s2778_s22  ;;  %s2199_s11 = sshll.u32 %s3762_s27, 1  ;;  %v851_v31 = vsel %vm849_vm2, %v822_v29, 0  ;;  %v3007_v34 = vld [vmem:[%s2938_s19] sm:$0xff]  ;;  %v3010_v35 = vld [vmem:[%s2938_s19 + $0x8] sm:$0xff]  ;;  %v1064_v44 = vpack.c.b16 %v1058_v43, %v1058_v43  ;;  %v933_v48 = vunpack.c.l.b16 %v493_v46  ;;  %vm828_vm5 = vcmask 687104   ;;  %s2325_s21 = sadd.s32 4294967295, %s2929_s18 }
  0x34   : > { %588 = vrot.lane.b32.xlu2 %v2952_v4, %s2778_s22  ;;  %p424_p13 = scmp.lt.s32.totalorder %s2199_s11, 15  ;;  %v571_v17 = vpack.c.b16 %v570_v12, %v569_v11  ;;  %v596_v28 = vpack.c.b16 %v595_v19, %v594_v18  ;;  %2531 = vmatpush.bf16.msra.mxu1 %v851_v31  ;;  %v3022_v37 = vld [vmem:[%s2938_s19 + $0x10] sm:$0xff]  ;;  %v3031_v38 = vld [vmem:[%s2938_s19 + $0x18] sm:$0xff]  ;;  %v2482_v39 = vld [vmem:[%s2938_s19 + $0x20] sm:$0xff]  ;;  %vm782_vm6 = vcmask 1047552   ;;  %vm739_vm9 = vcmask 1040384  }
  0x35   : > { %s448_s14 = scalar_select %p447_p12, 1, 0  ;;  %855 = vmatpush.bf16.msra.mxu0 %v851_v31  ;;  %v1101_v45 = vsel %vm849_vm2, %v1064_v44, 0  ;;  %v939_v49 = vpack.c.b16 %v933_v48, %v933_v48  ;;  %v2490_v52 = vld [vmem:[%s3706_s3 + $0x20] sm:$0xff]  ;;  %v2498_v53 = vld [vmem:[%s3706_s3 + $0x68] sm:$0xff]  ;;  %v2496_v55 = vld [vmem:[%s3706_s3 + $0x58] sm:$0xff] }
  0x36   : > { %s3764_s11 = smov (!%p424_p13, %s2199_s11), 15  ;;  %1105 = vmatpush.bf16.msra.mxu2 %v1101_v45  ;;  %v2497_v54 = vld [vmem:[%s3706_s3 + $0x60] sm:$0xff]  ;;  %v2489_v56 = vld [vmem:[%s3706_s3 + $0x18] sm:$0xff]  ;;  %v2488_v6 = vld [vmem:[%s3706_s3 + $0x10] sm:$0xff]  ;;  %vm783_vm7 = vsmask.f32 7424 }
  0x37   : > { %v449_v15 = vstv %s448_s14  ;;  %s2477_s10 = sshll.u32 %s3764_s11, 3  ;;  %v976_v50 = vsel %vm849_vm2, %v939_v49, 0  ;;  %v2487_v13 = vld [vmem:[%s3706_s3 + $0x8] sm:$0xff]  ;;  %vm3110_vm8 = vmand %vm782_vm6, %vm783_vm7  ;;  %vm740_vm10 = vsmask.f32 256  ;;  %vm1327_vm15 = vcmask 257024  }
  0x38   : > { %vm2970_vm1 = vcmp.eq.s32.totalorder %v449_v15, 1  ;;  %s2977_s26 = scalar_lea.vmem %s3704_s1, %s2477_s10  ;;  %2532 = vmatpush.bf16.msra.mxu1 %v2495_v32  ;;  %vm3146_vm11 = vmand %vm739_vm9, %vm740_vm10  ;;  %s2780_s18 = smov 32  }
  0x39   : > { %v445_v20 = vld [vmem:[%s2977_s26 + $0x8] sm:$0xf]  ;;  %v446_v21 = vld [vmem:[%s2977_s26 + $0xc] sm:$0xf]  ;;  %856 = vmatpush.bf16.msra.mxu0 %v2495_v32  ;;  %v443_v63 = vld [vmem:[%s2977_s26] sm:$0xf] }
  0x3a   : > { %v453_v22 = vsel %vm2970_vm1, 0, %v445_v20  ;;  %v454_v23 = vsel %vm2970_vm1, 0, %v446_v21  ;;  %1106 = vmatpush.bf16.msra.mxu2 %v2500_v47  ;;  %v444_v0 = vld [vmem:[%s2977_s26 + $0x4] sm:$0xf]  ;;  %v451_v7 = vsel %vm2970_vm1, 0, %v443_v63  ;;  %s2781_s23 = smov 64  }
  0x3b   : > { %609 = vrot.lane.b32.xlu0 %v2944_v2, %s2779_s8  ;;  %611 = vrot.lane.b32.xlu1 %v2952_v4, %s2779_s8  ;;  %v539_v25 = vunpack.c.l.b16 %v453_v22  ;;  %v540_v26 = vunpack.c.l.b16 %v454_v23  ;;  %v452_v8 = vsel %vm2970_vm1, 0, %v444_v0  ;;  %v537_v9 = vunpack.c.l.b16 %v451_v7  ;;  %s2530_s27 = sshll.u32 %s2766_s30, 6  ;;  %s2688_s17 = scalar_lea.hbm %s3710_s7, 128 }
  0x3c   : > { %613 = vrot.lane.b32.xlu2 %v571_v17, %s2779_s8  ;;  %2533 = vmatpush.bf16.msra.mxu1 %v2494_v33  ;;  %v538_v10 = vunpack.c.l.b16 %v452_v8  ;;  %s2043_s15 = scalar_lea.hbm %s3710_s7, %s2530_s27 }
  0x3d   : > { %v2993_v30 = vpack.c.b16 %v540_v26, %v539_v25  ;;  %857 = vmatpush.bf16.msra.mxu0 %v2494_v33  ;;  %s2046_s11 = sshll.u32 %s2043_s15, 4  ;;  %s2047_s11 = int_to_ptr.hbm [resolvable:$true] %s2046_s11 }
  0x3e   : > { %1107 = vmatpush.bf16.msra.mxu2 %v2499_v51  ;;  %v557_v14 = vpack.c.b16 %v538_v10, %v537_v9  ;;  %s2682_s26 = sshra.s32 %s2047_s11, 4  ;;  %s2683_s26 = int_to_ptr.hbm [resolvable:$true] %s2682_s26 }
  0x3f   : > { %p2689_p7 = scmp.lt.s32.totalorder %s2683_s26, %s3710_s7 }
  0x40   : > { %2534 = vmatpush.bf16.msra.mxu1 %v2493_v36 }
  0x41   : > { %858 = vmatpush.bf16.msra.mxu0 %v2493_v36 }
  0x42   : > { %1108 = vmatpush.bf16.msra.mxu2 %v2498_v53 }
  0x43   : > { %590 = vrot.lane.b32.xlu0 %v571_v17, %s2778_s22  ;;  %615 = vrot.lane.b32.xlu1 %v596_v28, %s2779_s8 }
  0x44   : > { %572 = vrot.lane.b32.xlu2 %v2993_v30, %s2778_s22  ;;  %2535 = vmatpush.bf16.msra.mxu1 %v2492_v40 }
  0x45   : > { %859 = vmatpush.bf16.msra.mxu0 %v2492_v40 }
  0x46   : > { %1109 = vmatpush.bf16.msra.mxu2 %v2497_v54 }
  0x48   : > { %2536 = vmatpush.bf16.msra.mxu1 %v2491_v41 }
  0x49   : > { %860 = vmatpush.bf16.msra.mxu0 %v2491_v41 }
  0x4a   : > { %1110 = vmatpush.bf16.msra.mxu2 %v2496_v55 }
  0x4b   : > { %597 = vrot.lane.b32.xlu0 %v3007_v34, %s2779_s8  ;;  %574 = vrot.lane.b32.xlu1 %v3007_v34, %s2778_s22 }
  0x4c   : > { %599 = vrot.lane.b32.xlu2 %v3010_v35, %s2779_s8  ;;  %980 = vmatpush.bf16.msrb.mxu1 %v976_v50 }
  0x50   : > { %981 = vmatpush.bf16.msrb.mxu1 %v2490_v52 }
  0x53   : > { %576 = vrot.lane.b32.xlu0 %v3010_v35, %s2778_s22  ;;  %601 = vrot.lane.b32.xlu1 %v3022_v37, %s2779_s8 }
  0x54   : > { %578 = vrot.lane.b32.xlu2 %v3022_v37, %s2778_s22  ;;  %982 = vmatpush.bf16.msrb.mxu1 %v2489_v56 }
  0x58   : > { %983 = vmatpush.bf16.msrb.mxu1 %v2488_v6 }
  0x5b   : > { %603 = vrot.lane.b32.xlu0 %v3031_v38, %s2779_s8  ;;  %580 = vrot.lane.b32.xlu1 %v3031_v38, %s2778_s22 }
  0x5c   : > { %605 = vrot.lane.b32.xlu2 %v2482_v39, %s2779_s8  ;;  %984 = vmatpush.bf16.msrb.mxu1 %v2487_v13 }
  0x63   : > { %582 = vrot.lane.b32.xlu0 %v2482_v39, %s2778_s22  ;;  %607 = vrot.lane.b32.xlu1 %v2941_v1, %s2779_s8 }
  0x8e   : > { %v589_v57 = vpop.permute.xlu2 %588 }
  0x8f   : > { %v644_v33 = vsel %vm617_vm3, %v2944_v2, %v589_v57 }
  0x96   : > { %v614_v5 = vpop.permute.xlu2 %613 }
  0x9e   : > { %v573_v15 = vpop.permute.xlu2 %572 }
  0x9f   : > { %v620_v18 = vsel %vm617_vm3, %v557_v14, %v573_v15 }
  0xa5   : > { %v585_v58 = vpop.permute.xlu0 %584  ;;  %v587_v59 = vpop.permute.xlu1 %586 }
  0xa6   : > { %v638_v60 = vsel %vm617_vm3, %v2482_v39, %v585_v58  ;;  %v641_v17 = vsel %vm617_vm3, %v2941_v1, %v587_v59  ;;  %v2486_v1 = vld [vmem:[%s3706_s3] sm:$0xff]  ;;  %v600_v26 = vpop.permute.xlu2 %599  ;;  %v3121_v39 = vsel %vm648_vm4, %v644_v33, %v614_v5 }
  0xa7   : > { %985 = vmatpush.bf16.msrb.mxu1 %v2486_v1 }
  0xad   : > { %v610_v61 = vpop.permute.xlu0 %609  ;;  %v612_v62 = vpop.permute.xlu1 %611 }
  0xae   : > { %v3081_v3 = vsel %vm648_vm4, %v638_v60, %v610_v61  ;;  %v3100_v20 = vsel %vm648_vm4, %v641_v17, %v612_v62  ;;  %v579_v50 = vpop.permute.xlu2 %578 }
  0xaf   : > { %2260 = vmatmul.msk.bf16.vlgmr.msra.gmra.mxu1 %vm828_vm5, %v3081_v3  ;;  %v629_v51 = vsel %vm617_vm3, %v3010_v35, %v579_v50 }
  0xb5   : > { %v591_v11 = vpop.permute.xlu0 %590  ;;  %v616_v12 = vpop.permute.xlu1 %615 }
  0xb6   : > { %v647_v46 = vsel %vm617_vm3, %v2952_v4, %v591_v11  ;;  %v606_v63 = vpop.permute.xlu2 %605 }
  0xb7   : > { %v3135_v49 = vsel %vm648_vm4, %v647_v46, %v616_v12 }
  0xbd   : > { %v598_v19 = vpop.permute.xlu0 %597  ;;  %v575_v21 = vpop.permute.xlu1 %574 }
  0xbe   : > { %v650_v16 = vsel %vm648_vm4, %v620_v18, %v598_v19  ;;  %v623_v25 = vsel %vm617_vm3, %v2993_v30, %v575_v21 }
  0xbf   : > { %v669_v22 = vshrl.u32 %v650_v16, 16  ;;  %v672_v23 = vshll.u32 %v650_v16, 16  ;;  %2261 = vmatmul.msk.bf16.gmra.mxu1 %vm828_vm5, %v3100_v20  ;;  %2254 = vmatmul.msk.bf16.vlgmr.msra.gmra.mxu0 %vm828_vm5, %v650_v16  ;;  %v652_v29 = vsel %vm648_vm4, %v623_v25, %v600_v26  ;;  %v708_v25 = vshll.u32 %v3081_v3, 16 }
  0xc0   : > { %v678_v32 = vshll.u32 %v652_v29, 16  ;;  %v675_v36 = vshrl.u32 %v652_v29, 16 }
  0xc1   : > { %v752_v24 = vrot.slane %v672_v23, 1  ;;  %v671_v54 = vrot.slane %v669_v22, 7 }
  0xc2   : > { %v754_v30 = vrot.slane %v678_v32, 1  ;;  %v677_v6 = vrot.slane %v675_v36, 7 }
  0xc3   : > { %v753_v27 = vor.u32 %v752_v24, %v669_v22  ;;  %v674_v56 = vor.u32 %v672_v23, %v671_v54 }
  0xc4   : > { %v755_v41 = vor.u32 %v754_v30, %v675_v36  ;;  %v680_v8 = vor.u32 %v678_v32, %v677_v6  ;;  %v714_v30 = vshll.u32 %v3100_v20, 16 }
  0xc5   : > { %v785_v31 = vsel %vm3110_vm8, %v753_v27, 0  ;;  %v577_v40 = vpop.permute.xlu0 %576  ;;  %v602_v43 = vpop.permute.xlu1 %601  ;;  %v742_v35 = vsel %vm3146_vm11, 0, %v674_v56  ;;  %v764_v27 = vrot.slane %v708_v25, 1 }
  0xc6   : > { %2314 = vmatmul.msk.bf16.vlgmr.msra.gmra.mxu2 %vm828_vm5, %v785_v31  ;;  %v626_v42 = vsel %vm617_vm3, %v3007_v34, %v577_v40  ;;  %v786_v44 = vsel %vm3110_vm8, %v755_v41, 0  ;;  %v743_v11 = vsel %vm3146_vm11, 0, %v680_v8  ;;  %v705_v31 = vshrl.u32 %v3081_v3, 16 }
  0xc7   : > { %v654_v2 = vsel %vm648_vm4, %v626_v42, %v602_v43  ;;  %v766_v42 = vrot.slane %v714_v30, 1  ;;  %v711_v3 = vshrl.u32 %v3100_v20, 16 }
  0xc8   : > { %v684_v45 = vshll.u32 %v654_v2, 16  ;;  %v681_v47 = vshrl.u32 %v654_v2, 16  ;;  %v765_v32 = vor.u32 %v764_v27, %v705_v31  ;;  %v707_v54 = vrot.slane %v705_v31, 7 }
  0xc9   : > { %v713_v6 = vrot.slane %v711_v3, 7 }
  0xca   : > { %v756_v48 = vrot.slane %v684_v45, 1  ;;  %v683_v18 = vrot.slane %v681_v47, 7  ;;  %v791_v33 = vsel %vm3110_vm8, %v765_v32, 0 }
  0xcc   : > { %v757_v34 = vor.u32 %v756_v48, %v681_v47  ;;  %v686_v16 = vor.u32 %v684_v45, %v683_v18  ;;  %v720_v47 = vshll.u32 %v3121_v39, 16 }
  0xcd   : > { %v604_v52 = vpop.permute.xlu0 %603  ;;  %v581_v60 = vpop.permute.xlu1 %580 }
  0xce   : > { %v787_v53 = vsel %vm3110_vm8, %v757_v34, 0  ;;  %v656_v4 = vsel %vm648_vm4, %v629_v51, %v604_v52  ;;  %v632_v62 = vsel %vm617_vm3, %v3022_v37, %v581_v60  ;;  %v744_v23 = vsel %vm3146_vm11, 0, %v686_v16 }
  0xcf   : > { %2262 = vmatmul.msk.bf16.gmra.mxu1 %vm828_vm5, %v3121_v39  ;;  %2255 = vmatmul.msk.bf16.gmra.mxu0 %vm828_vm5, %v652_v29  ;;  %v690_v55 = vshll.u32 %v656_v4, 16  ;;  %v687_v57 = vshrl.u32 %v656_v4, 16  ;;  %v658_v5 = vsel %vm648_vm4, %v632_v62, %v606_v63  ;;  %v768_v34 = vrot.slane %v720_v47, 1 }
  0xd0   : > { %v696_v7 = vshll.u32 %v658_v5, 16  ;;  %v693_v9 = vshrl.u32 %v658_v5, 16  ;;  %v717_v51 = vshrl.u32 %v3121_v39, 16  ;;  %v723_v60 = vshrl.u32 %v3135_v49, 16 }
  0xd1   : > { %v758_v58 = vrot.slane %v690_v55, 1  ;;  %v689_v24 = vrot.slane %v687_v57, 7 }
  0xd2   : > { %v760_v10 = vrot.slane %v696_v7, 1  ;;  %v695_v36 = vrot.slane %v693_v9, 7  ;;  %v769_v52 = vor.u32 %v768_v34, %v717_v51 }
  0xd3   : > { %v759_v61 = vor.u32 %v758_v58, %v687_v57  ;;  %v692_v26 = vor.u32 %v690_v55, %v689_v24  ;;  %v726_v55 = vshll.u32 %v3135_v49, 16  ;;  %v710_v57 = vor.u32 %v708_v25, %v707_v54 }
  0xd4   : > { %v761_v37 = vor.u32 %v760_v10, %v693_v9  ;;  %v698_v40 = vor.u32 %v696_v7, %v695_v36  ;;  %v716_v7 = vor.u32 %v714_v30, %v713_v6 }
  0xd5   : > { %v788_v0 = vsel %vm3110_vm8, %v759_v61, 0  ;;  %v583_v12 = vpop.permute.xlu0 %582  ;;  %v608_v14 = vpop.permute.xlu1 %607  ;;  %v745_v29 = vsel %vm3146_vm11, 0, %v692_v26  ;;  %v748_v39 = vsel %vm3146_vm11, 0, %v710_v57 }
  0xd6   : > { %2315 = vmatmul.msk.bf16.gmra.mxu2 %vm828_vm5, %v786_v44  ;;  %v635_v13 = vsel %vm617_vm3, %v3031_v38, %v583_v12  ;;  %v789_v15 = vsel %vm3110_vm8, %v761_v37, 0  ;;  %v746_v43 = vsel %vm3146_vm11, 0, %v698_v40  ;;  %v767_v44 = vor.u32 %v766_v42, %v711_v3 }
  0xd7   : > { %v660_v17 = vsel %vm648_vm4, %v635_v13, %v608_v14  ;;  %v719_v12 = vrot.slane %v717_v51, 7 }
  0xd8   : > { %v702_v19 = vshll.u32 %v660_v17, 16  ;;  %v699_v21 = vshrl.u32 %v660_v17, 16  ;;  %v792_v45 = vsel %vm3110_vm8, %v767_v44, 0 }
  0xd9   : > { %v722_v14 = vor.u32 %v720_v47, %v719_v12 }
  0xda   : > { %v762_v22 = vrot.slane %v702_v19, 1  ;;  %v701_v46 = vrot.slane %v699_v21, 7 }
  0xdb   : > { %v750_v16 = vsel %vm3146_vm11, 0, %v722_v14 }
  0xdc   : > { %v763_v1 = vor.u32 %v762_v22, %v699_v21  ;;  %v704_v48 = vor.u32 %v702_v19, %v701_v46  ;;  %v3234_v19 = vld [vmem:[%s3707_s4] ss:$0 sm:$0xff] }
  0xde   : > { %v790_v38 = vsel %vm3110_vm8, %v763_v1, 0  ;;  %v747_v20 = vsel %vm3146_vm11, 0, %v704_v48 }
  0xdf   : > { %2263 = vmatmul.msk.bf16.gmra.mxu1 %vm828_vm5, %v3135_v49  ;;  %2256 = vmatmul.msk.bf16.gmra.mxu0 %vm828_vm5, %v654_v2  ;;  %v749_v49 = vsel %vm3146_vm11, 0, %v716_v7 }
  0xe6   : > { %2316 = vmatmul.msk.bf16.gmra.mxu2 %vm828_vm5, %v787_v53 }
  0xef   : > { %2284 = vmatmul.msk.bf16.vlgmr.msrb.gmra.mxu1 %vm828_vm5, %v742_v35  ;;  %2257 = vmatmul.msk.bf16.gmra.mxu0 %vm828_vm5, %v656_v4  ;;  %v793_v4 = vsel %vm3110_vm8, %v769_v52, 0  ;;  %v770_v35 = vrot.slane %v726_v55, 1 }
  0xf1   : > { %v771_v61 = vor.u32 %v770_v35, %v723_v60 }
  0xf6   : > { %2317 = vmatmul.msk.bf16.gmra.mxu2 %vm828_vm5, %v788_v0  ;;  %v794_v0 = vsel %vm3110_vm8, %v771_v61, 0 }
  0xff   : > { %2285 = vmatmul.msk.bf16.gmra.mxu1 %vm828_vm5, %v743_v11  ;;  %2258 = vmatmul.msk.bf16.gmra.mxu0 %vm828_vm5, %v658_v5 }
 0x106   : > { %2318 = vmatmul.msk.bf16.gmra.mxu2 %vm828_vm5, %v789_v15 }
 0x10f   : > { %2286 = vmatmul.msk.bf16.gmra.mxu1 %vm828_vm5, %v744_v23  ;;  %2259 = vmatmul.msk.bf16.gmra.mxu0 %vm828_vm5, %v660_v17  ;;  %v3229_v17 = vstv %s2325_s21  ;;  %s403_s21 = sand.u32 1, %s2746_s25  }
 0x110   : > { %vm1237_vm12 = vcmp.ge.s32.totalorder %v3229_v17, 0  ;;  %vm1247_vm13 = vcmp.lt.s32.totalorder %v3229_v17, 16  ;;  %v1228_v42 = vadd.s32 1, %v3229_v17  ;;  %s2193_s12 = sshll.u32 %s403_s21, 6  ;;  %s2029_s30 = scalar_lea.sflag [#allocation5], %s403_s21 }
 0x111   : > { %vm3242_vm14 = vmand %vm1237_vm12, %vm1247_vm13  ;;  %s3591_s19 = scalar_lea.vmem [#allocation6], %s2193_s12 }
 0x112   : > { %vm1238_vm0 = vcmp.ge.s32.totalorder %v1228_v42, 0  ;;  %vm1248_vm1 = vcmp.lt.s32.totalorder %v1228_v42, 16  ;;  %s2044_s20 = sshll.u32 %s3591_s19, 4  ;;  %s2045_s20 = int_to_ptr.vmem [resolvable:$true] %s2044_s20 }
 0x113   : > { %vm1258_vm2 = vmand %vm1238_vm0, %vm1248_vm1 }
 0x116   : > { %2319 = vmatmul.msk.bf16.gmra.mxu2 %vm828_vm5, %v790_v38 }
 0x11f   : > { %2287 = vmatmul.msk.bf16.gmra.mxu1 %vm828_vm5, %v745_v29  ;;  %v725_v29 = vrot.slane %v723_v60, 7  ;;  %v1229_v60 = vadd.s32 2, %v3229_v17 }
 0x121   : > { %v728_v30 = vor.u32 %v726_v55, %v725_v29  ;;  %vm1239_vm3 = vcmp.ge.s32.totalorder %v1229_v60, 0  ;;  %vm1249_vm4 = vcmp.lt.s32.totalorder %v1229_v60, 16 }
 0x123   : > { %v751_v47 = vsel %vm3146_vm11, 0, %v728_v30 }
 0x126   : > { %2320 = vmatmul.msk.bf16.gmra.mxu2 %vm828_vm5, %v791_v33 }
 0x12c   : > { %v3186_v41 = vpop.f32.mrf.mxu1 }
 0x12f   : > { %2288 = vmatmul.msk.bf16.gmra.mxu1 %vm828_vm5, %v746_v43 }
 0x134   : > { %v3192_v2 = vpop.f32.mrf.mxu1 }
 0x136   : > { %2321 = vmatmul.msk.bf16.gmra.mxu2 %vm828_vm5, %v792_v45 }
 0x13c   : > { %v3198_v50 = vpop.f32.mrf.mxu1  ;;  %v862_v5 = vpop.f32.mrf.mxu0 }
 0x13f   : > { %2289 = vmatmul.msk.bf16.gmra.mxu1 %vm828_vm5, %v747_v20 }
 0x144   : > { %v3204_v53 = vpop.f32.mrf.mxu1  ;;  %v864_v10 = vpop.f32.mrf.mxu0 }
 0x146   : > { %2322 = vmatmul.msk.bf16.gmra.mxu2 %vm828_vm5, %v793_v4 }
 0x149   : > { %v1112_v56 = vpop.f32.mrf.mxu2 }
 0x14c   : > { %v3210_v58 = vpop.f32.mrf.mxu1  ;;  %v867_v13 = vpop.f32.mrf.mxu0 }
 0x14f   : > { %2290 = vmatmul.msk.bf16.gmra.mxu1 %vm828_vm5, %v748_v39 }
 0x151   : > { %v1114_v62 = vpop.f32.mrf.mxu2 }
 0x154   : > { %v3216_v63 = vpop.f32.mrf.mxu1  ;;  %v869_v24 = vpop.f32.mrf.mxu0 }
 0x156   : > { %2323 = vmatmul.msk.bf16.gmra.mxu2 %vm828_vm5, %v794_v0 }
 0x159   : > { %v1117_v8 = vpop.f32.mrf.mxu2 }
 0x15c   : > { %v3221_v9 = vpop.f32.mrf.mxu1  ;;  %v872_v46 = vpop.f32.mrf.mxu0 }
 0x15f   : > { %2291 = vmatmul.msk.bf16.gmra.mxu1 %vm828_vm5, %v749_v49 }
 0x161   : > { %v1119_v37 = vpop.f32.mrf.mxu2 }
 0x164   : > { %v3226_v11 = vpop.f32.mrf.mxu1  ;;  %v874_v57 = vpop.f32.mrf.mxu0 }
 0x169   : > { %v1122_v22 = vpop.f32.mrf.mxu2 }
 0x16c   : > { %v987_v15 = vpop.f32.mrf.mxu1  ;;  %v877_v49 = vpop.f32.mrf.mxu0 }
 0x16d   : > { %v988_v18 = vadd.f32 %v987_v15, %v862_v5 }
 0x16f   : > { %v1162_v21 = vadd.f32 %v1112_v56, %v988_v18  ;;  %2292 = vmatmul.msk.bf16.gmra.mxu1 %vm828_vm5, %v750_v16 }
 0x171   : > { %v1185_v23 = vadd.f32 %v3234_v19, %v1162_v21  ;;  %v1124_v36 = vpop.f32.mrf.mxu2 }
 0x173   : > { %v1205_v38 = vmax.f32 %v1185_v23, 0.0 }
 0x174   : > { %v989_v25 = vpop.f32.mrf.mxu1  ;;  %v879_v23 = vpop.f32.mrf.mxu0 }
 0x175   : > { %v1287_v26 = vsel %vm3242_vm14, %v1205_v38, 0.0  ;;  %v990_v27 = vadd.f32 %v989_v25, %v864_v10 }
 0x176   : > { %v1307_v31 = vpack.c.bf16 %v1287_v26, %v1287_v26 }
 0x177   : > { %v1163_v32 = vadd.f32 %v1114_v62, %v990_v27 }
 0x178   : > { %1328 = vst.msk [vmem:[#allocation2] sm:$0xf] %vm1327_vm15, %v1307_v31 }
 0x179   : > { %v1186_v33 = vadd.f32 %v3234_v19, %v1163_v32  ;;  %v1127_v51 = vpop.f32.mrf.mxu2 }
 0x17b   : > { %v1206_v40 = vmax.f32 %v1186_v33, 0.0 }
 0x17c   : > { %v992_v43 = vpop.f32.mrf.mxu1  ;;  %v882_v30 = vpop.f32.mrf.mxu0 }
 0x17d   : > { %v1288_v3 = vsel %vm3242_vm14, %v1206_v40, 0.0  ;;  %v993_v44 = vadd.f32 %v992_v43, %v867_v13 }
 0x17e   : > { %v1308_v45 = vpack.c.bf16 %v1288_v3, %v1288_v3 }
 0x17f   : > { %v1164_v48 = vadd.f32 %v1117_v8, %v993_v44  ;;  %2293 = vmatmul.msk.bf16.gmra.mxu1 %vm828_vm5, %v751_v47  ;;  %vm1259_vm5 = vmand %vm1239_vm3, %vm1249_vm4  ;;  %v1231_v44 = vadd.s32 4, %v3229_v17 }
 0x180   : > { %1329 = vst.msk [vmem:[#allocation2 + $0x4] sm:$0xf] %vm1327_vm15, %v1308_v45 }
 0x181   : > { %v1187_v34 = vadd.f32 %v3234_v19, %v1164_v48  ;;  %v1129_v5 = vpop.f32.mrf.mxu2  ;;  %vm1241_vm10 = vcmp.ge.s32.totalorder %v1231_v44, 0  ;;  %vm1251_vm12 = vcmp.lt.s32.totalorder %v1231_v44, 16 }
 0x182   : > { %vm3273_vm13 = vmand %vm1241_vm10, %vm1251_vm12 }
 0x183   : > { %v1207_v20 = vmax.f32 %v1187_v34, 0.0 }
 0x184   : > { %v994_v52 = vpop.f32.mrf.mxu1 }
 0x185   : > { %v1289_v4 = vsel %vm1258_vm2, %v1207_v20, 0.0  ;;  %v995_v54 = vadd.f32 %v994_v52, %v869_v24 }
 0x186   : > { %v1309_v55 = vpack.c.bf16 %v1289_v4, %v1289_v4 }
 0x187   : > { %v1165_v56 = vadd.f32 %v1119_v37, %v995_v54 }
 0x188   : > { %1330 = vst.msk [vmem:[#allocation2 + $0x8] sm:$0xf] %vm1327_vm15, %v1309_v55 }
 0x189   : > { %v1188_v35 = vadd.f32 %v3234_v19, %v1165_v56  ;;  %v1132_v18 = vpop.f32.mrf.mxu2 }
 0x18b   : > { %v1208_v39 = vmax.f32 %v1188_v35, 0.0 }
 0x18c   : > { %v997_v61 = vpop.f32.mrf.mxu1 }
 0x18d   : > { %v1290_v62 = vsel %vm1258_vm2, %v1208_v39, 0.0  ;;  %v998_v0 = vadd.f32 %v997_v61, %v872_v46 }
 0x18e   : > { %v1310_v6 = vpack.c.bf16 %v1290_v62, %v1290_v62 }
 0x18f   : > { %v1166_v7 = vadd.f32 %v1122_v22, %v998_v0  ;;  %v1230_v22 = vadd.s32 3, %v3229_v17 }
 0x190   : > { %1331 = vst.msk [vmem:[#allocation2 + $0xc] sm:$0xf] %vm1327_vm15, %v1310_v6  ;;  %v1232_v6 = vadd.s32 5, %v3229_v17 }
 0x191   : > { %v1189_v8 = vadd.f32 %v3234_v19, %v1166_v7  ;;  %vm1240_vm6 = vcmp.ge.s32.totalorder %v1230_v22, 0  ;;  %vm1250_vm7 = vcmp.lt.s32.totalorder %v1230_v22, 16  ;;  %v1134_v29 = vpop.f32.mrf.mxu2 }
 0x192   : > { %vm1260_vm9 = vmand %vm1240_vm6, %vm1250_vm7  ;;  %vm1242_vm14 = vcmp.ge.s32.totalorder %v1232_v6, 0  ;;  %vm1252_vm0 = vcmp.lt.s32.totalorder %v1232_v6, 16 }
 0x193   : > { %v1209_v10 = vmax.f32 %v1189_v8, 0.0  ;;  %vm3290_vm1 = vmand %vm1242_vm14, %vm1252_vm0 }
 0x194   : > { %v999_v12 = vpop.f32.mrf.mxu1 }
 0x195   : > { %v1291_v37 = vsel %vm1259_vm5, %v1209_v10, 0.0  ;;  %v1000_v13 = vadd.f32 %v999_v12, %v874_v57 }
 0x196   : > { %v1311_v14 = vpack.c.bf16 %v1291_v37, %v1291_v37 }
 0x197   : > { %v1167_v15 = vadd.f32 %v1124_v36, %v1000_v13 }
 0x198   : > { %1332 = vst.msk [vmem:[#allocation2 + $0x10] sm:$0xf] %vm1327_vm15, %v1311_v14 }
 0x199   : > { %v1190_v16 = vadd.f32 %v3234_v19, %v1167_v15  ;;  %v1137_v45 = vpop.f32.mrf.mxu2 }
 0x19b   : > { %v1210_v21 = vmax.f32 %v1190_v16, 0.0 }
 0x19c   : > { %v1002_v1 = vpop.f32.mrf.mxu1 }
 0x19d   : > { %v1292_v38 = vsel %vm1259_vm5, %v1210_v21, 0.0  ;;  %v1003_v24 = vadd.f32 %v1002_v1, %v877_v49 }
 0x19e   : > { %v1312_v25 = vpack.c.bf16 %v1292_v38, %v1292_v38 }
 0x19f   : > { %v1168_v26 = vadd.f32 %v1127_v51, %v1003_v24  ;;  %v884_v51 = vpop.f32.mrf.mxu0 }
 0x1a0   : > { %1333 = vst.msk [vmem:[#allocation2 + $0x14] sm:$0xf] %vm1327_vm15, %v1312_v25 }
 0x1a1   : > { %v1191_v27 = vadd.f32 %v3234_v19, %v1168_v26  ;;  %v1139_v35 = vpop.f32.mrf.mxu2 }
 0x1a3   : > { %v1211_v31 = vmax.f32 %v1191_v27, 0.0  ;;  %v1233_v27 = vadd.s32 6, %v3229_v17 }
 0x1a4   : > { %v1004_v32 = vpop.f32.mrf.mxu1 }
 0x1a5   : > { %v1293_v33 = vsel %vm1260_vm9, %v1211_v31, 0.0  ;;  %v1005_v36 = vadd.f32 %v1004_v32, %v879_v23  ;;  %vm1243_vm2 = vcmp.ge.s32.totalorder %v1233_v27, 0  ;;  %vm1253_vm3 = vcmp.lt.s32.totalorder %v1233_v27, 16 }
 0x1a6   : > { %v1313_v40 = vpack.c.bf16 %v1293_v33, %v1293_v33  ;;  %vm3310_vm4 = vmand %vm1243_vm2, %vm1253_vm3  ;;  %v1236_v27 = vadd.s32 9, %v3229_v17  ;;  %vm1512_vm2 = vcmask 523264   ;;  %vm1661_vm3 = vcmask 785408  }
 0x1a7   : > { %v1169_v42 = vadd.f32 %v1129_v5, %v1005_v36  ;;  %v887_v0 = vpop.f32.mrf.mxu0 }
 0x1a8   : > { %1334 = vst.msk [vmem:[#allocation2 + $0x18] sm:$0xf] %vm1327_vm15, %v1313_v40  ;;  %vm1256_vm14 = vcmp.lt.s32.totalorder %v1236_v27, 16  ;;  %v2522_v40 = vld [vmem:[%s3708_s5 + $0x58] sm:$0xff] }
 0x1a9   : > { %v1192_v43 = vadd.f32 %v3234_v19, %v1169_v42  ;;  %v1142_v37 = vpop.f32.mrf.mxu2  ;;  %2537 = vmatpush.bf16.msra.mxu3 %v2522_v40  ;;  %1680 = vmatpush.bf16.msrb.mxu2 %v2522_v40 }
 0x1ab   : > { %v1212_v3 = vmax.f32 %v1192_v43, 0.0 }
 0x1ac   : > { %v1007_v46 = vpop.f32.mrf.mxu1 }
 0x1ad   : > { %v1294_v47 = vsel %vm1260_vm9, %v1212_v3, 0.0  ;;  %v1008_v48 = vadd.f32 %v1007_v46, %v882_v30 }
 0x1ae   : > { %v1314_v34 = vpack.c.bf16 %v1294_v47, %v1294_v47 }
 0x1af   : > { %v1170_v20 = vadd.f32 %v1132_v18, %v1008_v48  ;;  %v889_v18 = vpop.f32.mrf.mxu0 }
 0x1b0   : > { %1335 = vst.msk [vmem:[#allocation2 + $0x1c] sm:$0xf] %vm1327_vm15, %v1314_v34 }
 0x1b1   : > { %v1193_v52 = vadd.f32 %v3234_v19, %v1170_v20  ;;  %v1144_v25 = vpop.f32.mrf.mxu2  ;;  %v1234_v20 = vadd.s32 7, %v3229_v17 }
 0x1b3   : > { %v1213_v54 = vmax.f32 %v1193_v52, 0.0  ;;  %vm1244_vm5 = vcmp.ge.s32.totalorder %v1234_v20, 0  ;;  %vm1254_vm6 = vcmp.lt.s32.totalorder %v1234_v20, 16 }
 0x1b4   : > { %v1009_v55 = vpop.f32.mrf.mxu1  ;;  %vm3331_vm7 = vmand %vm1244_vm5, %vm1254_vm6 }
 0x1b5   : > { %v1295_v56 = vsel %vm3273_vm13, %v1213_v54, 0.0  ;;  %v1010_v57 = vadd.f32 %v1009_v55, %v884_v51 }
 0x1b6   : > { %v1315_v39 = vpack.c.bf16 %v1295_v56, %v1295_v56 }
 0x1b7   : > { %v1171_v60 = vadd.f32 %v1134_v29, %v1010_v57  ;;  %v3279_v61 = vld [vmem:[#allocation2 + $0x18] sm:$0xff]  ;;  %v2516_v57 = vld [vmem:[%s3708_s5 + $0x28] sm:$0xff] }
 0x1b8   : > { %1336 = vst.msk [vmem:[#allocation2 + $0x20] sm:$0xf] %vm1327_vm15, %v1315_v39  ;;  %1454 = vrot.lane.b32.xlu2 %v3279_v61, %s2780_s18 }
 0x1b9   : > { %v1194_v62 = vadd.f32 %v3234_v19, %v1171_v60  ;;  %v1147_v43 = vpop.f32.mrf.mxu2 }
 0x1bb   : > { %v1214_v5 = vmax.f32 %v1194_v62, 0.0 }
 0x1bc   : > { %v1012_v7 = vpop.f32.mrf.mxu1 }
 0x1bd   : > { %v1296_v8 = vsel %vm3273_vm13, %v1214_v5, 0.0  ;;  %v1013_v49 = vadd.f32 %v1012_v7, %v887_v0  ;;  %vm1246_vm13 = vcmp.ge.s32.totalorder %v1236_v27, 0 }
 0x1be   : > { %v1316_v10 = vpack.c.bf16 %v1296_v8, %v1296_v8  ;;  %vm3376_vm0 = vmand %vm1246_vm13, %vm1256_vm14 }
 0x1bf   : > { %v1172_v12 = vadd.f32 %v1137_v45, %v1013_v49  ;;  %v1235_v49 = vadd.s32 8, %v3229_v17 }
 0x1c0   : > { %1337 = vst.msk [vmem:[#allocation2 + $0x24] sm:$0xf] %vm1327_vm15, %v1316_v10 }
 0x1c1   : > { %v1195_v13 = vadd.f32 %v3234_v19, %v1172_v12  ;;  %v1149_v4 = vpop.f32.mrf.mxu2  ;;  %vm1245_vm9 = vcmp.ge.s32.totalorder %v1235_v49, 0  ;;  %vm1255_vm10 = vcmp.lt.s32.totalorder %v1235_v49, 16 }
 0x1c2   : > { %vm3352_vm12 = vmand %vm1245_vm9, %vm1255_vm10 }
 0x1c3   : > { %v1215_v15 = vmax.f32 %v1195_v13, 0.0 }
 0x1c4   : > { %v1014_v16 = vpop.f32.mrf.mxu1 }
 0x1c5   : > { %v1297_v21 = vsel %vm3290_vm1, %v1215_v15, 0.0  ;;  %v1015_v22 = vadd.f32 %v1014_v16, %v889_v18 }
 0x1c6   : > { %v1317_v23 = vpack.c.bf16 %v1297_v21, %v1297_v21 }
 0x1c7   : > { %v1173_v1 = vadd.f32 %v1139_v35, %v1015_v22  ;;  %v3296_v38 = vld [vmem:[#allocation2 + $0x20] sm:$0xff] }
 0x1c8   : > { %1338 = vst.msk [vmem:[#allocation2 + $0x28] sm:$0xf] %vm1327_vm15, %v1317_v23  ;;  %1456 = vrot.lane.b32.xlu1 %v3296_v38, %s2780_s18  ;;  %1475 = vrot.lane.b32.xlu0 %v3296_v38, %s2781_s23 }
 0x1c9   : > { %v1196_v24 = vadd.f32 %v3234_v19, %v1173_v1  ;;  %v1152_v6 = vpop.f32.mrf.mxu2 }
 0x1cb   : > { %v1216_v26 = vmax.f32 %v1196_v24, 0.0 }
 0x1cc   : > { %v1017_v29 = vpop.f32.mrf.mxu1 }
 0x1cd   : > { %v1298_v31 = vsel %vm3290_vm1, %v1216_v26, 0.0  ;;  %v1018_v32 = vadd.f32 %v1017_v29, %v3186_v41  ;;  %vm1487_vm1 = vcmask 261120  }
 0x1ce   : > { %v1318_v33 = vpack.c.bf16 %v1298_v31, %v1298_v31 }
 0x1cf   : > { %v1174_v36 = vadd.f32 %v1142_v37, %v1018_v32 }
 0x1d0   : > { %1339 = vst.msk [vmem:[#allocation2 + $0x2c] sm:$0xf] %vm1327_vm15, %v1318_v33 }
 0x1d1   : > { %v1197_v30 = vadd.f32 %v3234_v19, %v1174_v36  ;;  %v1154_v15 = vpop.f32.mrf.mxu2 }
 0x1d3   : > { %v1217_v42 = vmax.f32 %v1197_v30, 0.0 }
 0x1d4   : > { %v1019_v3 = vpop.f32.mrf.mxu1 }
 0x1d5   : > { %v1299_v44 = vsel %vm3310_vm4, %v1217_v42, 0.0  ;;  %v1020_v41 = vadd.f32 %v1019_v3, %v3192_v2 }
 0x1d6   : > { %v1319_v45 = vpack.c.bf16 %v1299_v44, %v1299_v44 }
 0x1d7   : > { %v1175_v46 = vadd.f32 %v1144_v25, %v1020_v41  ;;  %v3317_v47 = vld [vmem:[#allocation2 + $0x28] sm:$0xff] }
 0x1d8   : > { %1340 = vst.msk [vmem:[#allocation2 + $0x30] sm:$0xf] %vm1327_vm15, %v1319_v45  ;;  %1458 = vrot.lane.b32.xlu0 %v3317_v47, %s2780_s18  ;;  %1477 = vrot.lane.b32.xlu2 %v3317_v47, %s2781_s23 }
 0x1d9   : > { %v1198_v48 = vadd.f32 %v3234_v19, %v1175_v46  ;;  %v1157_v29 = vpop.f32.mrf.mxu2 }
 0x1db   : > { %v1218_v34 = vmax.f32 %v1198_v48, 0.0 }
 0x1dc   : > { %v1022_v51 = vpop.f32.mrf.mxu1 }
 0x1dd   : > { %v1300_v2 = vsel %vm3310_vm4, %v1218_v34, 0.0  ;;  %v1023_v52 = vadd.f32 %v1022_v51, %v3198_v50  ;;  %v2520_v34 = vld [vmem:[%s3708_s5 + $0x48] sm:$0xff] }
 0x1de   : > { %v1320_v54 = vpack.c.bf16 %v1300_v2, %v1300_v2 }
 0x1df   : > { %v1176_v55 = vadd.f32 %v1147_v43, %v1023_v52 }
 0x1e0   : > { %1341 = vst.msk [vmem:[#allocation2 + $0x34] sm:$0xf] %vm1327_vm15, %v1320_v54  ;;  %v3398_v54 = vld [vmem:[#allocation2 + $0x8] sm:$0xff] }
 0x1e1   : > { %v1199_v56 = vadd.f32 %v3234_v19, %v1176_v55  ;;  %v1159_v41 = vpop.f32.mrf.mxu2  ;;  %v2517_v55 = vld [vmem:[%s3708_s5 + $0x30] sm:$0xff] }
 0x1e3   : > { %v1219_v35 = vmax.f32 %v1199_v56, 0.0 }
 0x1e4   : > { %v1024_v39 = vpop.f32.mrf.mxu1 }
 0x1e5   : > { %v1301_v60 = vsel %vm3331_vm7, %v1219_v35, 0.0  ;;  %v1025_v50 = vadd.f32 %v1024_v39, %v3204_v53  ;;  %v2528_v35 = vld [vmem:[%s3708_s5 + $0x88] sm:$0xff]  ;;  %v2515_v39 = vld [vmem:[%s3708_s5 + $0x20] sm:$0xff] }
 0x1e6   : > { %v1321_v62 = vpack.c.bf16 %v1301_v60, %v1301_v60  ;;  %1898 = vmatpush.bf16.msrb.mxu0 %v2528_v35  ;;  %v2527_v60 = vld [vmem:[%s3708_s5 + $0x80] sm:$0xff] }
 0x1e7   : > { %v1177_v0 = vadd.f32 %v1149_v4, %v1025_v50  ;;  %v3338_v5 = vld [vmem:[#allocation2 + $0x30] sm:$0xff] }
 0x1e8   : > { %1342 = vst.msk [vmem:[#allocation2 + $0x38] sm:$0xf] %vm1327_vm15, %v1321_v62  ;;  %1479 = vrot.lane.b32.xlu1 %v3338_v5, %s2781_s23  ;;  %1460 = vrot.lane.b32.xlu2 %v3338_v5, %s2780_s18  ;;  %v2503_v4 = vld [vmem:[#allocation2 + $0x10] sm:$0xff] }
 0x1e9   : > { %v1200_v7 = vadd.f32 %v3234_v19, %v1177_v0 }
 0x1ea   : > { %1899 = vmatpush.bf16.msrb.mxu0 %v2527_v60 }
 0x1eb   : > { %v1220_v8 = vmax.f32 %v1200_v7, 0.0  ;;  %v2514_v7 = vld [vmem:[%s3708_s5 + $0x18] sm:$0xff] }
 0x1ec   : > { %v1027_v10 = vpop.f32.mrf.mxu1 }
 0x1ed   : > { %v1302_v53 = vsel %vm3331_vm7, %v1220_v8, 0.0  ;;  %v1028_v12 = vadd.f32 %v1027_v10, %v3210_v58  ;;  %v2526_v8 = vld [vmem:[%s3708_s5 + $0x78] sm:$0xff] }
 0x1ee   : > { %v1322_v37 = vpack.c.bf16 %v1302_v53, %v1302_v53  ;;  %1900 = vmatpush.bf16.msrb.mxu0 %v2526_v8 }
 0x1ef   : > { %v1178_v13 = vadd.f32 %v1152_v6, %v1028_v12 }
 0x1f0   : > { %1343 = vst.msk [vmem:[#allocation2 + $0x3c] sm:$0xf] %vm1327_vm15, %v1322_v37  ;;  %v2513_v37 = vld [vmem:[%s3708_s5 + $0x10] sm:$0xff] }
 0x1f1   : > { %v1201_v14 = vadd.f32 %v3234_v19, %v1178_v13  ;;  %v2525_v13 = vld [vmem:[%s3708_s5 + $0x70] sm:$0xff] }
 0x1f2   : > { %1901 = vmatpush.bf16.msrb.mxu0 %v2525_v13 }
 0x1f3   : > { %v1221_v16 = vmax.f32 %v1201_v14, 0.0 }
 0x1f4   : > { %v1029_v21 = vpop.f32.mrf.mxu1 }
 0x1f5   : > { %v1303_v22 = vsel %vm3352_vm12, %v1221_v16, 0.0  ;;  %v1030_v58 = vadd.f32 %v1029_v21, %v3216_v63  ;;  %v2512_v16 = vld [vmem:[%s3708_s5 + $0x8] sm:$0xff] }
 0x1f6   : > { %v1323_v23 = vpack.c.bf16 %v1303_v22, %v1303_v22  ;;  %v2524_v21 = vld [vmem:[%s3708_s5 + $0x68] sm:$0xff] }
 0x1f7   : > { %v1179_v1 = vadd.f32 %v1154_v15, %v1030_v58  ;;  %v3359_v24 = vld [vmem:[#allocation2 + $0x38] sm:$0xff]  ;;  %1902 = vmatpush.bf16.msrb.mxu0 %v2524_v21 }
 0x1f8   : > { %1344 = vst.msk [vmem:[#allocation2 + $0x40] sm:$0xf] %vm1327_vm15, %v1323_v23  ;;  %1462 = vrot.lane.b32.xlu1 %v3359_v24, %s2780_s18  ;;  %1481 = vrot.lane.b32.xlu0 %v3359_v24, %s2781_s23 }
 0x1f9   : > { %v1202_v25 = vadd.f32 %v3234_v19, %v1179_v1 }
 0x1fb   : > { %v1222_v26 = vmax.f32 %v1202_v25, 0.0  ;;  %v2511_v25 = vld [vmem:[%s3708_s5] sm:$0xff] }
 0x1fc   : > { %v1032_v31 = vpop.f32.mrf.mxu1 }
 0x1fd   : > { %v1304_v63 = vsel %vm3352_vm12, %v1222_v26, 0.0  ;;  %v1033_v32 = vadd.f32 %v1032_v31, %v3221_v9  ;;  %v2521_v9 = vld [vmem:[%s3708_s5 + $0x50] sm:$0xff] }
 0x1fe   : > { %v1324_v33 = vpack.c.bf16 %v1304_v63, %v1304_v63  ;;  %2538 = vmatpush.bf16.msra.mxu3 %v2521_v9  ;;  %1681 = vmatpush.bf16.msrb.mxu2 %v2521_v9 }
 0x1ff   : > { %v1180_v36 = vadd.f32 %v1157_v29, %v1033_v32  ;;  %v2501_v32 = vld [vmem:[#allocation2] sm:$0xff] }
 0x200   : > { %1345 = vst.msk [vmem:[#allocation2 + $0x44] sm:$0xf] %vm1327_vm15, %v1324_v33 }
 0x201   : > { %v1203_v30 = vadd.f32 %v3234_v19, %v1180_v36 }
 0x202   : > { %2539 = vmatpush.bf16.msra.mxu3 %v2520_v34  ;;  %1682 = vmatpush.bf16.msrb.mxu2 %v2520_v34 }
 0x203   : > { %v1223_v42 = vmax.f32 %v1203_v30, 0.0 }
 0x204   : > { %v1034_v43 = vpop.f32.mrf.mxu1 }
 0x205   : > { %v1305_v3 = vsel %vm3376_vm0, %v1223_v42, 0.0  ;;  %v1035_v44 = vadd.f32 %v1034_v43, %v3226_v11  ;;  %v2519_v11 = vld [vmem:[%s3708_s5 + $0x40] sm:$0xff] }
 0x206   : > { %v1325_v45 = vpack.c.bf16 %v1305_v3, %v1305_v3  ;;  %2540 = vmatpush.bf16.msra.mxu3 %v2519_v11  ;;  %1683 = vmatpush.bf16.msrb.mxu2 %v2519_v11 }
 0x207   : > { %v1181_v46 = vadd.f32 %v1159_v41, %v1035_v44  ;;  %v2509_v48 = vld [vmem:[#allocation2 + $0x40] sm:$0xff] }
 0x208   : > { %1346 = vst.msk [vmem:[#allocation2 + $0x48] sm:$0xf] %vm1327_vm15, %v1325_v45  ;;  %1464 = vrot.lane.b32.xlu0 %v2509_v48, %s2780_s18  ;;  %1483 = vrot.lane.b32.xlu2 %v2509_v48, %s2781_s23 }
 0x209   : > { %v1204_v20 = vadd.f32 %v3234_v19, %v1181_v46  ;;  %v2518_v19 = vld [vmem:[%s3708_s5 + $0x38] sm:$0xff] }
 0x20a   : > { %2541 = vmatpush.bf16.msra.mxu3 %v2518_v19  ;;  %1684 = vmatpush.bf16.msrb.mxu2 %v2518_v19 }
 0x20b   : > { %v1224_v51 = vmax.f32 %v1204_v20, 0.0 }
 0x20d   : > { %v1306_v2 = vsel %vm3376_vm0, %v1224_v51, 0.0 }
 0x20e   : > { %v1326_v52 = vpack.c.bf16 %v1306_v2, %v1306_v2  ;;  %2542 = vmatpush.bf16.msra.mxu3 %v2517_v55  ;;  %1685 = vmatpush.bf16.msrb.mxu2 %v2517_v55 }
 0x210   : > { %1347 = vst.msk [vmem:[#allocation2 + $0x4c] sm:$0xf] %vm1327_vm15, %v1326_v52  ;;  %1471 = vrot.lane.b32.xlu0 %v2503_v4, %s2781_s23  ;;  %1450 = vrot.lane.b32.xlu2 %v3398_v54, %s2780_s18 }
 0x212   : > { %1789 = vmatpush.bf16.msrb.mxu3 %v2516_v57  ;;  %v1455_v50 = vpop.permute.xlu2 %1454 }
 0x213   : > { %v1496_v62 = vsel %vm1487_vm1, %v2503_v4, %v1455_v50 }
 0x216   : > { %1790 = vmatpush.bf16.msrb.mxu3 %v2515_v39 }
 0x217   : > { %v2510_v56 = vld [vmem:[#allocation2 + $0x48] sm:$0xff] }
 0x218   : > { %1485 = vrot.lane.b32.xlu1 %v2510_v56, %s2781_s23  ;;  %1473 = vrot.lane.b32.xlu2 %v3279_v61, %s2781_s23 }
 0x21a   : > { %1791 = vmatpush.bf16.msrb.mxu3 %v2514_v7 }
 0x21e   : > { %1792 = vmatpush.bf16.msrb.mxu3 %v2513_v37 }
 0x220   : > { %1452 = vrot.lane.b32.xlu1 %v2503_v4, %s2780_s18  ;;  %s2684_s18 = scalar_lea.hbm %s2683_s26, 64 }
 0x221   : > { %p2685_p0 = scmp.ne.s32.totalorder %s2683_s26, %s2684_s18  ;;  %p2690_p9 = scmp.lt.s32.totalorder %s2688_s17, %s2684_s18 }
 0x222   : > { %1793 = vmatpush.bf16.msrb.mxu3 %v2512_v16 }
 0x223   : > { %p2686_p4 = pnand %p2685_p0, %p2904_p1  ;;  %p2691_p10 = por %p2690_p9, %p2689_p7 }
 0x225   : > { %p2687_p5 = pneg %p2686_p4 }
 0x226   : > { %1794 = vmatpush.bf16.msrb.mxu3 %v2511_v25 }
 0x227   : > { %p2692_p6 = pnand %p2691_p10, %p2687_p5 }
 0x232   : > { %v1478_v53 = vpop.permute.xlu2 %1477 }
 0x23a   : > { %v1476_v0 = vpop.permute.xlu0 %1475  ;;  %v1457_v49 = vpop.permute.xlu1 %1456 }
 0x23b   : > { %v3428_v6 = vsel %vm1512_vm2, %v1496_v62, %v1476_v0  ;;  %v1499_v10 = vsel %vm1487_vm1, %v3279_v61, %v1457_v49 }
 0x23c   : > { %2392 = vmatmul.msk.bf16.vlgmr.msra.gmra.mxu3 %vm1661_vm3, %v3428_v6  ;;  %v3441_v12 = vsel %vm1512_vm2, %v1499_v10, %v1478_v53  ;;  %v1541_v56 = vshrl.u32 %v3428_v6, 16 }
 0x23d   : > { %v1550_v50 = vshll.u32 %v3441_v12, 16  ;;  %v1547_v7 = vshrl.u32 %v3441_v12, 16 }
 0x23e   : > { %v1543_v62 = vrot.slane %v1541_v56, 7 }
 0x23f   : > { %v1599_v0 = vrot.slane %v1550_v50, 1  ;;  %v1549_v13 = vrot.slane %v1547_v7, 7 }
 0x242   : > { %v1461_v22 = vpop.permute.xlu2 %1460 }
 0x243   : > { %v1505_v58 = vsel %vm1487_vm1, %v3317_v47, %v1461_v22 }
 0x24a   : > { %v1459_v14 = vpop.permute.xlu0 %1458 }
 0x24b   : > { %v1502_v61 = vsel %vm1487_vm1, %v3296_v38, %v1459_v14  ;;  %v2523_v38 = vld [vmem:[%s3708_s5 + $0x60] sm:$0xff] }
 0x24c   : > { %2393 = vmatmul.msk.bf16.gmra.mxu3 %vm1661_vm3, %v3441_v12  ;;  %1903 = vmatpush.bf16.msrb.mxu0 %v2523_v38 }
 0x25a   : > { %v1480_v15 = vpop.permute.xlu1 %1479 }
 0x25b   : > { %v3454_v18 = vsel %vm1512_vm2, %v1502_v61, %v1480_v15  ;;  %v1552_v15 = vor.u32 %v1550_v50, %v1549_v13 }
 0x25c   : > { %2394 = vmatmul.msk.bf16.gmra.mxu3 %vm1661_vm3, %v3454_v18  ;;  %v1556_v53 = vshll.u32 %v3454_v18, 16  ;;  %v1553_v12 = vshrl.u32 %v3454_v18, 16 }
 0x25d   : > { %v1588_v21 = vsel %vm3146_vm11, 0, %v1552_v15 }
 0x25e   : > { %v1601_v14 = vrot.slane %v1556_v53, 1 }
 0x260   : > { %v1602_v16 = vor.u32 %v1601_v14, %v1553_v12 }
 0x262   : > { %v1484_v26 = vpop.permute.xlu2 %1483  ;;  %v1621_v38 = vsel %vm3110_vm8, %v1602_v16, 0 }
 0x26a   : > { %v1482_v23 = vpop.permute.xlu0 %1481  ;;  %v1463_v27 = vpop.permute.xlu1 %1462 }
 0x26b   : > { %v3470_v1 = vsel %vm1512_vm2, %v1505_v58, %v1482_v23  ;;  %v1508_v29 = vsel %vm1487_vm1, %v3338_v5, %v1463_v27  ;;  %v1451_v63 = vpop.permute.xlu2 %1450  ;;  %v1555_v23 = vrot.slane %v1553_v12, 7 }
 0x26c   : > { %2395 = vmatmul.msk.bf16.gmra.mxu3 %vm1661_vm3, %v3470_v1  ;;  %v3480_v47 = vsel %vm1512_vm2, %v1508_v29, %v1484_v26  ;;  %v1490_v33 = vsel %vm1487_vm1, %v2501_v32, %v1451_v63  ;;  %v1562_v22 = vshll.u32 %v3470_v1, 16  ;;  %v1559_v25 = vshrl.u32 %v3470_v1, 16 }
 0x26d   : > { %v1558_v27 = vor.u32 %v1556_v53, %v1555_v23  ;;  %v1568_v32 = vshll.u32 %v3480_v47, 16 }
 0x26e   : > { %v1603_v18 = vrot.slane %v1562_v22, 1  ;;  %v1561_v1 = vrot.slane %v1559_v25, 7 }
 0x270   : > { %v1604_v29 = vor.u32 %v1603_v18, %v1559_v25 }
 0x272   : > { %v1622_v63 = vsel %vm3110_vm8, %v1604_v29, 0 }
 0x273   : > { %v1474_v45 = vpop.permute.xlu2 %1473 }
 0x27a   : > { %v1465_v31 = vpop.permute.xlu0 %1464 }
 0x27b   : > { %v1511_v9 = vsel %vm1487_vm1, %v3359_v24, %v1465_v31  ;;  %v1589_v31 = vsel %vm3146_vm11, 0, %v1558_v27 }
 0x27c   : > { %2396 = vmatmul.msk.bf16.gmra.mxu3 %vm1661_vm3, %v3480_v47 }
 0x282   : > { %v1472_v36 = vpop.permute.xlu0 %1471 }
 0x283   : > { %v1514_v30 = vsel %vm1512_vm2, %v1490_v33, %v1472_v36  ;;  %v1605_v36 = vrot.slane %v1568_v32, 1 }
 0x284   : > { %v1532_v40 = vshll.u32 %v1514_v30, 16  ;;  %2390 = vmatmul.msk.bf16.vlgmr.msrb.gmra.mxu2 %vm1661_vm3, %v1514_v30  ;;  %v1529_v17 = vshrl.u32 %v1514_v30, 16  ;;  %v1565_v30 = vshrl.u32 %v3480_v47, 16 }
 0x286   : > { %v1593_v42 = vrot.slane %v1532_v40, 1  ;;  %v1531_v46 = vrot.slane %v1529_v17, 7 }
 0x288   : > { %v1594_v5 = vor.u32 %v1593_v42, %v1529_v17  ;;  %v1534_v51 = vor.u32 %v1532_v40, %v1531_v46  ;;  %v1564_v17 = vor.u32 %v1562_v22, %v1561_v1  ;;  %v1606_v42 = vor.u32 %v1605_v36, %v1565_v30 }
 0x28a   : > { %v1486_v43 = vpop.permute.xlu1 %1485  ;;  %v1617_v3 = vsel %vm3110_vm8, %v1594_v5, 0  ;;  %v1585_v52 = vsel %vm3146_vm11, 0, %v1534_v51  ;;  %v1590_v5 = vsel %vm3146_vm11, 0, %v1564_v17 }
 0x28b   : > { %2454 = vmatmul.msk.bf16.vlgmr.msrb.gmra.mxu0 %vm1661_vm3, %v1617_v3  ;;  %v3493_v44 = vsel %vm1512_vm2, %v1511_v9, %v1486_v43  ;;  %v1623_v9 = vsel %vm3110_vm8, %v1606_v42, 0 }
 0x28c   : > { %2397 = vmatmul.msk.bf16.gmra.mxu3 %vm1661_vm3, %v3493_v44  ;;  %v1574_v43 = vshll.u32 %v3493_v44, 16 }
 0x28e   : > { %v1607_v47 = vrot.slane %v1574_v43, 1 }
 0x292   : > { %v1453_v41 = vpop.permute.xlu1 %1452 }
 0x293   : > { %v1493_v48 = vsel %vm1487_vm1, %v3398_v54, %v1453_v41  ;;  %v1544_v54 = vshll.u32 %v3428_v6, 16  ;;  %v1600_v6 = vor.u32 %v1599_v0, %v1547_v7  ;;  %v1567_v41 = vrot.slane %v1565_v30, 7 }
 0x294   : > { %v1516_v24 = vsel %vm1512_vm2, %v1493_v48, %v1474_v45  ;;  %v1571_v45 = vshrl.u32 %v3493_v44, 16 }
 0x295   : > { %v1538_v34 = vshll.u32 %v1516_v24, 16  ;;  %2391 = vmatmul.msk.bf16.gmra.mxu2 %vm1661_vm3, %v1516_v24  ;;  %v1535_v20 = vshrl.u32 %v1516_v24, 16  ;;  %v1597_v55 = vrot.slane %v1544_v54, 1  ;;  %v1546_v8 = vor.u32 %v1544_v54, %v1543_v62 }
 0x296   : > { %v1620_v10 = vsel %vm3110_vm8, %v1600_v6, 0  ;;  %v1570_v48 = vor.u32 %v1568_v32, %v1567_v41  ;;  %v1608_v24 = vor.u32 %v1607_v47, %v1571_v45 }
 0x297   : > { %v1595_v11 = vrot.slane %v1538_v34, 1  ;;  %v1537_v19 = vrot.slane %v1535_v20, 7  ;;  %v1598_v35 = vor.u32 %v1597_v55, %v1541_v56  ;;  %v1587_v49 = vsel %vm3146_vm11, 0, %v1546_v8 }
 0x299   : > { %v1596_v2 = vor.u32 %v1595_v11, %v1535_v20  ;;  %v1540_v57 = vor.u32 %v1538_v34, %v1537_v19  ;;  %v1619_v60 = vsel %vm3110_vm8, %v1598_v35, 0  ;;  %v1591_v34 = vsel %vm3146_vm11, 0, %v1570_v48 }
 0x29a   : > { %v1624_v20 = vsel %vm3110_vm8, %v1608_v24, 0  ;;  %v1573_v11 = vrot.slane %v1571_v45, 7 }
 0x29b   : > { %v1618_v4 = vsel %vm3110_vm8, %v1596_v2, 0  ;;  %v1586_v39 = vsel %vm3146_vm11, 0, %v1540_v57 }
 0x29c   : > { %2422 = vmatmul.msk.bf16.vlgmr.msrb.gmra.mxu3 %vm1661_vm3, %v1585_v52  ;;  %2455 = vmatmul.msk.bf16.gmra.mxu0 %vm1661_vm3, %v1618_v4  ;;  %v1576_v44 = vor.u32 %v1574_v43, %v1573_v11 }
 0x29e   : > { %v1592_v4 = vsel %vm3146_vm11, 0, %v1576_v44 }
 0x2ac   : > { %2423 = vmatmul.msk.bf16.gmra.mxu3 %vm1661_vm3, %v1586_v39  ;;  %2456 = vmatmul.msk.bf16.gmra.mxu0 %vm1661_vm3, %v1619_v60  ;;  %v3585_v39 = vld [vmem:[%s3709_s6] ss:$0 sm:$0xff] }
 0x2bc   : > { %2424 = vmatmul.msk.bf16.gmra.mxu3 %vm1661_vm3, %v1587_v49  ;;  %2457 = vmatmul.msk.bf16.gmra.mxu0 %vm1661_vm3, %v1620_v10 }
 0x2bf   : > { %v3524_v37 = vpop.f32.mrf.mxu3 }
 0x2c7   : > { %v3527_v61 = vpop.f32.mrf.mxu3 }
 0x2cc   : > { %2425 = vmatmul.msk.bf16.gmra.mxu3 %vm1661_vm3, %v1588_v21  ;;  %2458 = vmatmul.msk.bf16.gmra.mxu0 %vm1661_vm3, %v1621_v38 }
 0x2cf   : > { %v3536_v58 = vpop.f32.mrf.mxu3 }
 0x2d7   : > { %v3539_v26 = vpop.f32.mrf.mxu3 }
 0x2dc   : > { %2426 = vmatmul.msk.bf16.gmra.mxu3 %vm1661_vm3, %v1589_v31  ;;  %2459 = vmatmul.msk.bf16.gmra.mxu0 %vm1661_vm3, %v1622_v63 }
 0x2df   : > { %v3548_v33 = vpop.f32.mrf.mxu3 }
 0x2e7   : > { %v3551_v40 = vpop.f32.mrf.mxu3 }
 0x2ec   : > { %2427 = vmatmul.msk.bf16.gmra.mxu3 %vm1661_vm3, %v1590_v5  ;;  %2460 = vmatmul.msk.bf16.gmra.mxu0 %vm1661_vm3, %v1623_v9 }
 0x2ef   : > { %v3560_v3 = vpop.f32.mrf.mxu3 }
 0x2f7   : > { %v3563_v46 = vpop.f32.mrf.mxu3 }
 0x2fc   : > { %2428 = vmatmul.msk.bf16.gmra.mxu3 %vm1661_vm3, %v1591_v34  ;;  %2461 = vmatmul.msk.bf16.gmra.mxu0 %vm1661_vm3, %v1624_v20 }
 0x2ff   : > { %v3571_v51 = vpop.f32.mrf.mxu3 }
 0x307   : > { %v3573_v2 = vpop.f32.mrf.mxu3  ;;  %v1687_v55 = vpop.f32.mrf.mxu2 }
 0x308   : > { %v1905_v52 = vpop.f32.mrf.mxu0 }
 0x30c   : > { %2429 = vmatmul.msk.bf16.gmra.mxu3 %vm1661_vm3, %v1592_v4 }
 0x30f   : > { %v3578_v28 = vpop.f32.mrf.mxu3  ;;  %v1689_v50 = vpop.f32.mrf.mxu2 }
 0x310   : > { %v1907_v54 = vpop.f32.mrf.mxu0 }
 0x317   : > { %v3580_v19 = vpop.f32.mrf.mxu3 }
 0x318   : > { %v1692_v13 = vpop.f32.mrf.mxu2 }
 0x319   : > { %v1910_v56 = vpop.f32.mrf.mxu0 }
 0x31f   : > { %v1796_v57 = vpop.f32.mrf.mxu3 }
 0x320   : > { %v1797_v35 = vadd.f32 %v1796_v57, %v1687_v55  ;;  %v1694_v18 = vpop.f32.mrf.mxu2 }
 0x321   : > { %v1912_v60 = vpop.f32.mrf.mxu0 }
 0x322   : > { %v1945_v59 = vadd.f32 %v1905_v52, %v1797_v35 }
 0x324   : > { %v1964_v62 = vadd.f32 %v3585_v39, %v1945_v59 }
 0x326   : > { %v1980_v0 = vmax.f32 %v1964_v62, 0.0 }
 0x327   : > { %v1798_v7 = vpop.f32.mrf.mxu3 }
 0x328   : > { %v1996_v8 = vpack.c.bf16 %v1980_v0, %v1980_v0  ;;  %v1799_v6 = vadd.f32 %v1798_v7, %v1689_v50 }
 0x329   : > { %v1915_v10 = vpop.f32.mrf.mxu0 }
 0x32a   : > { %2012 = vst.msk [vmem:[%s3591_s19] sm:$0xf] %vm1327_vm15, %v1996_v8  ;;  %v1946_v49 = vadd.f32 %v1907_v54, %v1799_v6 }
 0x32c   : > { %v1965_v53 = vadd.f32 %v3585_v39, %v1946_v49 }
 0x32e   : > { %v1981_v14 = vmax.f32 %v1965_v53, 0.0 }
 0x32f   : > { %v1801_v12 = vpop.f32.mrf.mxu3 }
 0x330   : > { %v1997_v15 = vpack.c.bf16 %v1981_v14, %v1981_v14  ;;  %v1802_v16 = vadd.f32 %v1801_v12, %v1692_v13 }
 0x331   : > { %v1917_v22 = vpop.f32.mrf.mxu0 }
 0x332   : > { %2013 = vst.msk [vmem:[%s3591_s19 + $0x4] sm:$0xf] %vm1327_vm15, %v1997_v15  ;;  %v1947_v21 = vadd.f32 %v1910_v56, %v1802_v16 }
 0x334   : > { %v1966_v38 = vadd.f32 %v3585_v39, %v1947_v21 }
 0x336   : > { %v1982_v23 = vmax.f32 %v1966_v38, 0.0 }
 0x337   : > { %v1803_v25 = vpop.f32.mrf.mxu3 }
 0x338   : > { %v1998_v27 = vpack.c.bf16 %v1982_v23, %v1982_v23  ;;  %v1804_v29 = vadd.f32 %v1803_v25, %v1694_v18 }
 0x339   : > { %v1920_v36 = vpop.f32.mrf.mxu0 }
 0x33a   : > { %2014 = vst.msk [vmem:[%s3591_s19 + $0x8] sm:$0xf] %vm1327_vm15, %v1998_v27  ;;  %v1948_v31 = vadd.f32 %v1912_v60, %v1804_v29 }
 0x33c   : > { %v1967_v63 = vadd.f32 %v3585_v39, %v1948_v31 }
 0x33e   : > { %v1983_v32 = vmax.f32 %v1967_v63, 0.0 }
 0x33f   : > { %v1806_v1 = vpop.f32.mrf.mxu3 }
 0x340   : > { %v1999_v30 = vpack.c.bf16 %v1983_v32, %v1983_v32  ;;  %v1807_v17 = vadd.f32 %v1806_v1, %v3524_v37 }
 0x341   : > { %v1922_v45 = vpop.f32.mrf.mxu0 }
 0x342   : > { %2015 = vst.msk [vmem:[%s3591_s19 + $0xc] sm:$0xf] %vm1327_vm15, %v1999_v30  ;;  %v1949_v42 = vadd.f32 %v1915_v10, %v1807_v17 }
 0x344   : > { %v1968_v5 = vadd.f32 %v3585_v39, %v1949_v42 }
 0x346   : > { %v1984_v9 = vmax.f32 %v1968_v5, 0.0 }
 0x347   : > { %v1808_v43 = vpop.f32.mrf.mxu3 }
 0x348   : > { %v2000_v41 = vpack.c.bf16 %v1984_v9, %v1984_v9  ;;  %v1809_v47 = vadd.f32 %v1808_v43, %v3527_v61 }
 0x349   : > { %v1925_v52 = vpop.f32.mrf.mxu0 }
 0x34a   : > { %2016 = vst.msk [vmem:[%s3591_s19 + $0x10] sm:$0xf] %vm1327_vm15, %v2000_v41  ;;  %v1950_v48 = vadd.f32 %v1917_v22, %v1809_v47 }
 0x34c   : > { %v1969_v24 = vadd.f32 %v3585_v39, %v1950_v48 }
 0x34e   : > { %v1985_v34 = vmax.f32 %v1969_v24, 0.0 }
 0x34f   : > { %v1811_v37 = vpop.f32.mrf.mxu3 }
 0x350   : > { %v2001_v20 = vpack.c.bf16 %v1985_v34, %v1985_v34  ;;  %v1812_v11 = vadd.f32 %v1811_v37, %v3536_v58 }
 0x351   : > { %v1927_v60 = vpop.f32.mrf.mxu0 }
 0x352   : > { %2017 = vst.msk [vmem:[%s3591_s19 + $0x14] sm:$0xf] %vm1327_vm15, %v2001_v20  ;;  %v1951_v44 = vadd.f32 %v1920_v36, %v1812_v11 }
 0x354   : > { %v1970_v4 = vadd.f32 %v3585_v39, %v1951_v44 }
 0x356   : > { %v1986_v61 = vmax.f32 %v1970_v4, 0.0 }
 0x357   : > { %v1813_v54 = vpop.f32.mrf.mxu3 }
 0x358   : > { %v2002_v55 = vpack.c.bf16 %v1986_v61, %v1986_v61  ;;  %v1814_v56 = vadd.f32 %v1813_v54, %v3539_v26 }
 0x359   : > { %v1930_v26 = vpop.f32.mrf.mxu0 }
 0x35a   : > { %2018 = vst.msk [vmem:[%s3591_s19 + $0x18] sm:$0xf] %vm1327_vm15, %v2002_v55  ;;  %v1952_v57 = vadd.f32 %v1922_v45, %v1814_v56 }
 0x35c   : > { %v1971_v35 = vadd.f32 %v3585_v39, %v1952_v57 }
 0x35e   : > { %v1987_v58 = vmax.f32 %v1971_v35, 0.0 }
 0x35f   : > { %v1816_v59 = vpop.f32.mrf.mxu3 }
 0x360   : > { %v2003_v50 = vpack.c.bf16 %v1987_v58, %v1987_v58  ;;  %v1817_v62 = vadd.f32 %v1816_v59, %v3548_v33 }
 0x361   : > { %v1932_v16 = vpop.f32.mrf.mxu0 }
 0x362   : > { %2019 = vst.msk [vmem:[%s3591_s19 + $0x1c] sm:$0xf] %vm1327_vm15, %v2003_v50  ;;  %v1953_v0 = vadd.f32 %v1925_v52, %v1817_v62 }
 0x364   : > { %v1972_v7 = vadd.f32 %v3585_v39, %v1953_v0 }
 0x366   : > { %v1988_v8 = vmax.f32 %v1972_v7, 0.0 }
 0x367   : > { %v1818_v6 = vpop.f32.mrf.mxu3 }
 0x368   : > { %v2004_v49 = vpack.c.bf16 %v1988_v8, %v1988_v8  ;;  %v1819_v10 = vadd.f32 %v1818_v6, %v3551_v40 }
 0x369   : > { %v1935_v27 = vpop.f32.mrf.mxu0 }
 0x36a   : > { %2020 = vst.msk [vmem:[%s3591_s19 + $0x20] sm:$0xf] %vm1327_vm15, %v2004_v49  ;;  %v1954_v53 = vadd.f32 %v1927_v60, %v1819_v10 }
 0x36c   : > { %v1973_v13 = vadd.f32 %v3585_v39, %v1954_v53 }
 0x36e   : > { %v1989_v14 = vmax.f32 %v1973_v13, 0.0 }
 0x36f   : > { %v1821_v33 = vpop.f32.mrf.mxu3 }
 0x370   : > { %v2005_v12 = vpack.c.bf16 %v1989_v14, %v1989_v14  ;;  %v1822_v15 = vadd.f32 %v1821_v33, %v3560_v3 }
 0x371   : > { %v1937_v30 = vpop.f32.mrf.mxu0 }
 0x372   : > { %2021 = vst.msk [vmem:[%s3591_s19 + $0x24] sm:$0xf] %vm1327_vm15, %v2005_v12  ;;  %v1955_v21 = vadd.f32 %v1930_v26, %v1822_v15 }
 0x374   : > { %v1974_v38 = vadd.f32 %v3585_v39, %v1955_v21 }
 0x376   : > { %v1990_v22 = vmax.f32 %v1974_v38, 0.0 }
 0x377   : > { %v1823_v40 = vpop.f32.mrf.mxu3 }
 0x378   : > { %v2006_v23 = vpack.c.bf16 %v1990_v22, %v1990_v22  ;;  %v1824_v18 = vadd.f32 %v1823_v40, %v3563_v46 }
 0x379   : > { %v1940_v41 = vpop.f32.mrf.mxu0 }
 0x37a   : > { %2022 = vst.msk [vmem:[%s3591_s19 + $0x28] sm:$0xf] %vm1327_vm15, %v2006_v23  ;;  %v1956_v25 = vadd.f32 %v1932_v16, %v1824_v18 }
 0x37c   : > { %v1975_v29 = vadd.f32 %v3585_v39, %v1956_v25 }
 0x37e   : > { %v1991_v3 = vmax.f32 %v1975_v29, 0.0 }
 0x37f   : > { %v1826_v31 = vpop.f32.mrf.mxu3 }
 0x380   : > { %v2007_v63 = vpack.c.bf16 %v1991_v3, %v1991_v3  ;;  %v1827_v32 = vadd.f32 %v1826_v31, %v3571_v51 }
 0x381   : > { %v1942_v44 = vpop.f32.mrf.mxu0 }
 0x382   : > { %2023 = vst.msk [vmem:[%s3591_s19 + $0x2c] sm:$0xf] %vm1327_vm15, %v2007_v63  ;;  %v1957_v36 = vadd.f32 %v1935_v27, %v1827_v32 }
 0x384   : > { %v1976_v1 = vadd.f32 %v3585_v39, %v1957_v36 }
 0x386   : > { %v1992_v46 = vmax.f32 %v1976_v1, 0.0 }
 0x387   : > { %v1828_v17 = vpop.f32.mrf.mxu3 }
 0x388   : > { %v2008_v42 = vpack.c.bf16 %v1992_v46, %v1992_v46  ;;  %v1829_v5 = vadd.f32 %v1828_v17, %v3573_v2 }
 0x38a   : > { %2024 = vst.msk [vmem:[%s3591_s19 + $0x30] sm:$0xf] %vm1327_vm15, %v2008_v42  ;;  %v1958_v9 = vadd.f32 %v1937_v30, %v1829_v5 }
 0x38c   : > { %v1977_v43 = vadd.f32 %v3585_v39, %v1958_v9 }
 0x38e   : > { %v1993_v51 = vmax.f32 %v1977_v43, 0.0 }
 0x38f   : > { %v1831_v47 = vpop.f32.mrf.mxu3 }
 0x390   : > { %v2009_v45 = vpack.c.bf16 %v1993_v51, %v1993_v51  ;;  %v1832_v48 = vadd.f32 %v1831_v47, %v3578_v28 }
 0x392   : > { %2025 = vst.msk [vmem:[%s3591_s19 + $0x34] sm:$0xf] %vm1327_vm15, %v2009_v45  ;;  %v1959_v24 = vadd.f32 %v1940_v41, %v1832_v48 }
 0x394   : > { %v1978_v34 = vadd.f32 %v3585_v39, %v1959_v24 }
 0x396   : > { %v1994_v37 = vmax.f32 %v1978_v34, 0.0 }
 0x397   : > { %v1833_v2 = vpop.f32.mrf.mxu3 }
 0x398   : > { %v2010_v20 = vpack.c.bf16 %v1994_v37, %v1994_v37  ;;  %v1834_v11 = vadd.f32 %v1833_v2, %v3580_v19 }
 0x39a   : > { %2026 = vst.msk [vmem:[%s3591_s19 + $0x38] sm:$0xf] %vm1327_vm15, %v2010_v20  ;;  %v1960_v52 = vadd.f32 %v1942_v44, %v1834_v11 }
 0x39c   : > { %v1979_v28 = vadd.f32 %v3585_v39, %v1960_v52 }
 0x39e   : > { %v1995_v4 = vmax.f32 %v1979_v28, 0.0 }
 0x3a0   : > { %v2011_v61 = vpack.c.bf16 %v1995_v4, %v1995_v4 }
 0x3a2   : > { %2027 = vst.msk [vmem:[%s3591_s19 + $0x3c] sm:$0xf] %vm1327_vm15, %v2011_v61 }
 0x3a3   : > { %2695 = shalt.err (!%p2692_p6)
}
 0x3a4   : > { %s2782_s21 = smov 4  }
 0x3a5   : > { %2545 = dma.vmem_to_hbm [thread:$0]  (%p2904_p1), %s2045_s20, 1024, %s2047_s11, %s2029_s30, %s2781_s23, %s2781_s23, %s2782_s21  }
 0x3a6 PF: > { %s2061_s19 = sand.u32 1, %s2742_s24   ;;  %p2552_p11 = pnand %p2185_p2, %p2909_p3 }
 0x3a7   : > { %s2062_s22 = scalar_lea.sflag [#allocation5], %s2061_s19 }
 0x3a8   : > { %p2553_p8 = pneg %p2552_p11 }
 0x3aa   : > { %2737 = dma.done.wait (%p2553_p8), %s2062_s22, 1024  }
 0x3ab   : > { %2739 = vsyncadd (%p2553_p8), %s2062_s22, 4294966272  ;;  %s23_s9 = sadd.s32 1, %s2774_s9   ;;  %s3745_s13 = sld [smem:[#allocation9_spill]] }
 0x3ac   : > { %p20_p12 = scmp.ge.s32.totalorder %s23_s9, 4   ;;  %s3746_s26 = sld [smem:[#allocation12_spill]] }
 0x3ad   : > { %s3747_s23 = sld [smem:[#allocation13_spill]]  ;;  %s3750_s24 = smov %s2746_s25 }
 0x3ae   : > { %s3748_s30 = sld [smem:[#allocation10_spill]]  ;;  %s3752_s27 = smov %s2758_s28 }
 0x3af   : > { %s3749_s8 = sld [smem:[#allocation11_spill]]  ;;  %s3753_s28 = smov %s2762_s29 }
 0x3b0   :  { %22 = sbr.rel (!%p20_p12) target bundleno = 8 (0x8), region = 99 }
 0x3b1   : > { %s3751_s25 = smov %s3745_s13 }
 0x3b3   : > { %s3754_s29 = smov %s3747_s23 }
 0x3b5   :  { %2068 = vsyncpa [#allocation4], 1 }
 0x3b6   :  { %2070 = vsyncpa [#allocation4 + $0x1], 1 }
 0x3b7   :  { %2071 = vsyncpa [#allocation5], 1 }
 0x3b8   :  { %2073 = vsyncpa [#allocation5 + $0x1], 1 }

</bundles_post_ra>
